<compile_context>
chip_gen: v6e
topology: v6e:2x2x1
jax: 0.10.0
libtpu: 0.0.40
codegen_flags: <defaults>
</compile_context>

<pallas_src>
from functools import partial

import jax
import jax.numpy as jnp
from jax.experimental import pallas as pl
from jax.experimental.pallas import tpu as pltpu


def _round_up(x, m):
    return ((x + m - 1) // m) * m


def _vmem_budget_bytes():
    """Generation-aware VMEM plan budget: 70% of physical VMEM, capped at 80 MiB
    (v5e/v6e have 128 MiB, v7x only 64 MiB). Falls back to the v7x value."""
    cap = 64 * 1024 * 1024
    try:
        info = pltpu.get_tpu_info()
        cap = int(getattr(info, "vmem_capacity_bytes", cap))
    except Exception:
        pass
    return int(min(int(cap * 0.7), 80 * 1024 * 1024))


def _pick_tv(Hp, Vp, vmem_limit, bp_hint=8, max_wout_buf=16 * 1024 * 1024):
    """Largest lane-dense V tile whose double-buffered residency
    (w_out bf16 + logits f32 + b_out) fits the VMEM plan, with a 16 MiB
    per-buffer cap on the w_out tile."""
    per_col = Hp * 2 + bp_hint * 4 + 8 * 4        # bytes per V column per buffer
    fixed = 4 * bp_hint * Hp * 2                  # bf16 LHS (+ slack)
    tv_budget = (vmem_limit - fixed) // (2 * per_col)
    tv_cap = max_wout_buf // (Hp * 2)
    tv = (min(tv_budget, tv_cap) // 128) * 128
    return int(max(128, min(tv, Vp)))


# ---------------------------------------------------------------------------
# Kernel 1: per-sequence precompute of the encoder-side attention projection
#   attn_e = encoder_outputs @ W_ae^T + b_ae   (constant across decode tokens)
# Gridded over merged (B*S) rows; "parallel" so v7x can split it across TCs.
# ---------------------------------------------------------------------------
def _attn_encoder_kernel(enc_ref, w_ae_ref, b_ae_ref, out_ref):
    proj = jnp.dot(enc_ref[...], w_ae_ref[...],
                   preferred_element_type=jnp.float32) + b_ae_ref[...]
    out_ref[...] = proj.astype(out_ref.dtype)


# ---------------------------------------------------------------------------
# Kernel 2: attention + GRU cell for one decode step (single block, no grid).
# Emits h_new in f32 (module output) and bf16 (MXU LHS for the projection).
# ---------------------------------------------------------------------------
def _attn_gru_kernel(emb_ref, h_ref, enc_ref, attn_e_ref, mask_ref,
                     w_ah_ref, b_ah_ref, w_score_ref,
                     w_ih_e_ref, w_ih_c_ref, b_ih_ref, w_hh_ref, b_hh_ref,
                     h_new_ref, h_bf16_ref):
    Hp = h_ref.shape[1]
    emb = emb_ref[...]                                  # (Bp, Ep)  f32
    h = h_ref[...]                                      # (Bp, Hp)  f32
    enc = enc_ref[...].astype(jnp.float32)              # (Bp, Sp, 2Hp)
    attn_e = attn_e_ref[...].astype(jnp.float32)        # (Bp, Sp, Hp)

    # ---------------- attention ----------------
    attn_h = jnp.dot(h.astype(jnp.bfloat16), w_ah_ref[...],
                     preferred_element_type=jnp.float32) + b_ah_ref[...]     # (Bp, Hp)
    align = jnp.tanh(attn_h[:, None, :] + attn_e)                            # (Bp, Sp, Hp)
    # score = <align, w_score> along H; additive -1e30 mask kills padded S slots
    scores = jnp.sum(align * w_score_ref[...][None, :, :], axis=-1) + mask_ref[...]
    m = jnp.max(scores, axis=1, keepdims=True)
    e = jnp.exp(scores - m)
    attn_w = e / jnp.sum(e, axis=1, keepdims=True)                           # (Bp, Sp)
    context = jnp.sum(attn_w[:, :, None] * enc, axis=1)                      # (Bp, 2Hp)

    # ---------------- GRU cell (PyTorch gate order r, z, n) ----------------
    gi = (jnp.dot(emb.astype(jnp.bfloat16), w_ih_e_ref[...],
                  preferred_element_type=jnp.float32)
          + jnp.dot(context.astype(jnp.bfloat16), w_ih_c_ref[...],
                    preferred_element_type=jnp.float32)
          + b_ih_ref[...])                                                    # (Bp, 3Hp)
    gh = jnp.dot(h.astype(jnp.bfloat16), w_hh_ref[...],
                 preferred_element_type=jnp.float32) + b_hh_ref[...]          # (Bp, 3Hp)
    r = jax.nn.sigmoid(gi[:, 0:Hp] + gh[:, 0:Hp])
    z = jax.nn.sigmoid(gi[:, Hp:2 * Hp] + gh[:, Hp:2 * Hp])
    n = jnp.tanh(gi[:, 2 * Hp:3 * Hp] + r * gh[:, 2 * Hp:3 * Hp])
    h_new = (1.0 - z) * n + z * h                                             # (Bp, Hp) f32

    h_new_ref[...] = h_new
    h_bf16_ref[...] = h_new.astype(jnp.bfloat16)


# ---------------------------------------------------------------------------
# Kernel 3: vocab projection, gridded over lane-dense V tiles ("parallel").
# ---------------------------------------------------------------------------
def _vocab_proj_kernel(h_ref, w_out_ref, b_out_ref, logits_ref):
    logits_ref[...] = (jnp.dot(h_ref[...], w_out_ref[...],
                               preferred_element_type=jnp.float32)
                       + b_out_ref[...])


# ---------------------------------------------------------------------------
# Parameter init (PyTorch-faithful layout) and packing (pad / transpose / bf16)
# ---------------------------------------------------------------------------
def init_params(key, hidden_dim, vocab_size, embedding_dim, padding_idx):
    H, V, E = hidden_dim, vocab_size, embedding_dim
    ks = jax.random.split(key, 12)

    def unif(k, shape, fan_in):
        bound = 1.0 / float(fan_in) ** 0.5
        return jax.random.uniform(k, shape, jnp.float32, -bound, bound)

    emb = jax.random.normal(ks[0], (V, E), jnp.float32)
    emb = emb.at[padding_idx].set(0.0)                       # nn.Embedding padding_idx

    return dict(
        embedding=emb,
        w_ah=unif(ks[1], (H, H), H),            b_ah=unif(ks[2], (H,), H),
        w_ae=unif(ks[3], (H, 2 * H), 2 * H),    b_ae=unif(ks[4], (H,), 2 * H),
        w_score=unif(ks[5], (1, H), H),          # Linear(H, 1, bias=False)
        w_ih=unif(ks[6], (3 * H, E + 2 * H), H), b_ih=unif(ks[7], (3 * H,), H),
        w_hh=unif(ks[8], (3 * H, H), H),         b_hh=unif(ks[9], (3 * H,), H),
        w_out=unif(ks[10], (V, H), H),           b_out=unif(ks[11], (V,), H),
    )


def pack_params(p):
    """Done ONCE per model: pad to (8,128) tiles, pre-transpose to (in,out),
    cast matmul weights to bf16, and pad V up to a multiple of the chosen TV."""
    V, E = p["embedding"].shape
    H = p["w_ah"].shape[0]
    Hp, Ep = _round_up(H, 128), _round_up(E, 128)
    H2p = 2 * Hp
    bf16 = jnp.bfloat16

    vmem_limit = _vmem_budget_bytes()
    Vp0 = _round_up(V, 128)
    TV = _pick_tv(Hp, Vp0, vmem_limit)
    Vp = _round_up(Vp0, TV)            # pad V up to a multiple of TV (no shrink loop)

    def pad2(x, r, c):
        return jnp.pad(x, ((0, r - x.shape[0]), (0, c - x.shape[1])))

    def pad_row(x, c):                 # (n,) -> (1, c)
        return jnp.pad(x[None, :], ((0, 0), (0, c - x.shape[0])))

    # GRU weights: split per-gate BEFORE padding so r/z/n slices at Hp stay valid.
    w_ih_e_raw, w_ih_c_raw = p["w_ih"][:, :E], p["w_ih"][:, E:]

    def pack_gates_w(w, in_dim_p):     # (3H, in) -> (in_p, 3Hp), transposed per gate
        gates = [pad2(w[g * H:(g + 1) * H, :].T, in_dim_p, Hp) for g in range(3)]
        return jnp.concatenate(gates, axis=1)

    def pack_gates_b(b):               # (3H,) -> (1, 3Hp)
        gates = [jnp.pad(b[g * H:(g + 1) * H], (0, Hp - H)) for g in range(3)]
        return jnp.concatenate(gates)[None, :]

    return dict(
        dims=(H, E, V, Hp, Ep, Vp, TV),
        vmem_limit=vmem_limit,
        embedding=jnp.pad(p["embedding"], ((0, 0), (0, Ep - E))),          # (V, Ep) f32
        w_ah_t=pad2(p["w_ah"].T, Hp, Hp).astype(bf16),                     # (Hp, Hp)
        b_ah=pad_row(p["b_ah"], Hp),
        w_ae_t=pad2(p["w_ae"].T, H2p, Hp).astype(bf16),                    # (2Hp, Hp)
        b_ae=pad_row(p["b_ae"], Hp),
        w_score=pad2(p["w_score"], 1, Hp),                                 # (1, Hp) f32 (VPU)
        w_ih_e_t=pack_gates_w(w_ih_e_raw, Ep).astype(bf16),                # (Ep, 3Hp)
        w_ih_c_t=pack_gates_w(w_ih_c_raw, H2p).astype(bf16),               # (2Hp, 3Hp)
        b_ih=pack_gates_b(p["b_ih"]),                                      # (1, 3Hp)
        w_hh_t=pack_gates_w(p["w_hh"], Hp).astype(bf16),                   # (Hp, 3Hp)
        b_hh=pack_gates_b(p["b_hh"]),
        w_out_t=pad2(p["w_out"].T, Hp, Vp).astype(bf16),                   # (Hp, Vp)
        b_out=pad_row(p["b_out"], Vp),                                     # (1, Vp) f32
    )


# ---------------------------------------------------------------------------
# Per-sequence precompute (hoisted out of the per-token path in a decode loop)
# ---------------------------------------------------------------------------
def precompute_encoder(packed, encoder_outputs):
    H, E, V, Hp, Ep, Vp, TV = packed["dims"]
    B, S, H2 = encoder_outputs.shape
    Bp, Sp, H2p = _round_up(B, 8), _round_up(S, 8), 2 * Hp

    enc_pad = jnp.pad(encoder_outputs.astype(jnp.float32),
                      ((0, Bp - B), (0, Sp - S), (0, H2p - H2))).astype(jnp.bfloat16)

    # merged-row view, gridded so long sequences pipeline and v7x can go parallel
    R = Bp * Sp
    TR = min(512, R)                   # R is a multiple of 64, so TR is (8,128)-safe
    Rp = _round_up(R, TR)
    enc_rows = jnp.pad(enc_pad.reshape(R, H2p), ((0, Rp - R), (0, 0)))

    attn_e_rows = pl.pallas_call(
        _attn_encoder_kernel,
        out_shape=jax.ShapeDtypeStruct((Rp, Hp), jnp.bfloat16),
        grid_spec=pltpu.PrefetchScalarGridSpec(
            num_scalar_prefetch=0, grid=(Rp // TR,),
            in_specs=[pl.BlockSpec((TR, H2p), lambda r: (r, 0)),
                      pl.BlockSpec((H2p, Hp), lambda r: (0, 0)),
                      pl.BlockSpec((1, Hp), lambda r: (0, 0))],
            out_specs=pl.BlockSpec((TR, Hp), lambda r: (r, 0))),
        compiler_params=pltpu.CompilerParams(
            dimension_semantics=("parallel",),
            vmem_limit_bytes=packed["vmem_limit"]),
    )(enc_rows, packed["w_ae_t"], packed["b_ae"])

    attn_e = attn_e_rows[:R].reshape(Bp, Sp, Hp)

    # f32 mask: -1e30 would overflow in bf16
    mask = jnp.where(jnp.arange(Sp)[None, :] < S, 0.0, -1e30).astype(jnp.float32)
    mask = jnp.broadcast_to(mask, (Bp, Sp))
    return dict(enc=enc_pad, attn_e=attn_e, mask=mask, B=B, S=S, Bp=Bp, Sp=Sp)


# ---------------------------------------------------------------------------
# One decode step: (a) attention+GRU kernel, (b) parallel vocab projection
# ---------------------------------------------------------------------------
def _decoder_step(packed, enc_pack, decoder_input, decoder_hidden):
    H, E, V, Hp, Ep, Vp, TV = packed["dims"]
    B, Bp, Sp = enc_pack["B"], enc_pack["Bp"], enc_pack["Sp"]
    NV = Vp // TV

    # glue: embedding gather + padding to hardware tiles
    emb = jnp.take(packed["embedding"], decoder_input, axis=0)            # (B, Ep)
    emb = jnp.pad(emb, ((0, Bp - B), (0, 0)))
    h0 = jnp.pad(decoder_hidden[0].astype(jnp.float32),
                 ((0, Bp - B), (0, Hp - H)))                               # (Bp, Hp)

    vmem = lambda: pl.BlockSpec(memory_space=pltpu.MemorySpace.VMEM)

    # ---- (a) attention + GRU cell (single block) ----
    h_new_pad, h_bf16 = pl.pallas_call(
        _attn_gru_kernel,
        out_shape=(jax.ShapeDtypeStruct((Bp, Hp), jnp.float32),
                   jax.ShapeDtypeStruct((Bp, Hp), jnp.bfloat16)),
        in_specs=[vmem()] * 13,
        out_specs=(vmem(), vmem()),
        compiler_params=pltpu.CompilerParams(
            vmem_limit_bytes=packed["vmem_limit"]),
    )(emb, h0, enc_pack["enc"], enc_pack["attn_e"], enc_pack["mask"],
      packed["w_ah_t"], packed["b_ah"], packed["w_score"],
      packed["w_ih_e_t"], packed["w_ih_c_t"], packed["b_ih"],
      packed["w_hh_t"], packed["b_hh"])

    # ---- (b) vocab projection: streamed bf16 w_out tiles, parallel V axis ----
    flops = 2 * Bp * Hp * Vp
    bytes_accessed = Hp * Vp * 2 + Bp * Vp * 4 + Bp * Hp * 2 + Vp * 4
    logits_pad = pl.pallas_call(
        _vocab_proj_kernel,
        out_shape=jax.ShapeDtypeStruct((Bp, Vp), jnp.float32),
        grid_spec=pltpu.PrefetchScalarGridSpec(
            num_scalar_prefetch=0, grid=(NV,),
            in_specs=[pl.BlockSpec((Bp, Hp), lambda j: (0, 0)),            # h (bf16)
                      pl.BlockSpec((Hp, TV), lambda j: (0, j)),            # w_out tile
                      pl.BlockSpec((1, TV), lambda j: (0, j))],            # b_out tile
            out_specs=pl.BlockSpec((Bp, TV), lambda j: (0, j))),           # lane-dense
        compiler_params=pltpu.CompilerParams(
            dimension_semantics=("parallel",),        # v7x: shard w_out stream on 2 TCs
            vmem_limit_bytes=packed["vmem_limit"]),
        cost_estimate=pl.CostEstimate(flops=flops, transcendentals=0,
                                      bytes_accessed=bytes_accessed),
    )(h_bf16, packed["w_out_t"], packed["b_out"])

    logits = logits_pad[:B, :V]
    h_new = h_new_pad[:B, :H]
    return logits[:, None, :], h_new[None, :, :]    # (B,1,V), (1,B,H) — PyTorch shapes


def decoder_forward(packed, decoder_input, decoder_hidden, encoder_outputs):
    """Matches Decoder.forward. In an autoregressive loop, precompute_encoder()
    (encoder-side attention projection) is hoisted out of the per-token path."""
    enc_pack = precompute_encoder(packed, encoder_outputs)
    return _decoder_step(packed, enc_pack, decoder_input, decoder_hidden)


# ---------------------------------------------------------------------------
# Pure-JAX reference (f32, unpadded) for a silent correctness check
# ---------------------------------------------------------------------------
def _reference_forward(raw, decoder_input, decoder_hidden, encoder_outputs):
    H = raw["w_ah"].shape[0]
    E = raw["embedding"].shape[1]
    emb = jnp.take(raw["embedding"], decoder_input, axis=0)
    h = decoder_hidden[0]
    attn_h = h @ raw["w_ah"].T + raw["b_ah"]
    attn_e = jnp.einsum("bsk,hk->bsh", encoder_outputs, raw["w_ae"]) + raw["b_ae"]
    align = jnp.tanh(attn_h[:, None, :] + attn_e)
    scores = jnp.einsum("bsh,h->bs", align, raw["w_score"][0])
    w = jax.nn.softmax(scores, axis=1)
    ctx = jnp.einsum("bs,bsk->bk", w, encoder_outputs)
    gi = emb @ raw["w_ih"][:, :E].T + ctx @ raw["w_ih"][:, E:].T + raw["b_ih"]
    gh = h @ raw["w_hh"].T + raw["b_hh"]
    r = jax.nn.sigmoid(gi[:, :H] + gh[:, :H])
    z = jax.nn.sigmoid(gi[:, H:2 * H] + gh[:, H:2 * H])
    n = jnp.tanh(gi[:, 2 * H:] + r * gh[:, 2 * H:])
    h_new = (1.0 - z) * n + z * h
    logits = h_new @ raw["w_out"].T + raw["b_out"]
    return logits[:, None, :], h_new[None]


if __name__ == "__main__":
    B, S, H, E, V = 2, 8, 32, 16, 64
    padding_idx = 0

    key = jax.random.PRNGKey(0)
    kp, k_in, k_h, k_enc = jax.random.split(key, 4)
    raw = init_params(kp, H, V, E, padding_idx)
    packed = pack_params(raw)                       # once per model

    decoder_input = jax.random.randint(k_in, (B,), 0, V)                    # token ids
    decoder_hidden = jax.random.normal(k_h, (1, B, H), jnp.float32)         # (1, B, H)
    encoder_outputs = jax.random.normal(k_enc, (B, S, 2 * H), jnp.float32)  # bi-dir encoder

    fwd = jax.jit(partial(decoder_forward, packed))
    logits, h_new = fwd(decoder_input, decoder_hidden, encoder_outputs)
    jax.block_until_ready((logits, h_new))

    # silent correctness check (tolerance loosened for bf16 matmuls / bf16 enc storage)
    ref_logits, ref_h = _reference_forward(raw, decoder_input, decoder_hidden,
                                           encoder_outputs)
    assert logits.shape == (B, 1, V) and h_new.shape == (1, B, H)
    assert jnp.allclose(logits, ref_logits, atol=5e-2, rtol=5e-2)
    assert jnp.allclose(h_new, ref_h, atol=5e-2, rtol=5e-2)

    print("KERNEL_OK")
</pallas_src>

<mosaic_0001>
module attributes {stable_mosaic.version = 11 : i64} {
  func.func @_attn_encoder_kernel(%arg0: i32, %arg1: memref<64x256xbf16, #tpu.memory_space<vmem>>, %arg2: memref<256x128xbf16, #tpu.memory_space<vmem>>, %arg3: memref<1x128xf32, #tpu.memory_space<vmem>>, %arg4: memref<64x128xbf16, #tpu.memory_space<vmem>>) attributes {dimension_semantics = [#tpu.dimension_semantics<parallel>], iteration_bounds = array<i64: 1>, scalar_prefetch = 0 : i64, scratch_operands = 0 : i64, tpu.core_type = #tpu.core_type<tc>, window_params = [{transform_indices = @transform_0, window_bounds = array<i64: 64, 256>}, {pipeline_mode = #tpu.pipeline_mode<synchronous>, transform_indices = @transform_1, window_bounds = array<i64: 256, 128>}, {pipeline_mode = #tpu.pipeline_mode<synchronous>, transform_indices = @transform_2, window_bounds = array<i64: 1, 128>}, {transform_indices = @transform_3, window_bounds = array<i64: 64, 128>}]} {
    %c0 = arith.constant 0 : index
    %c0_0 = arith.constant 0 : index
    %0 = vector.load %arg1[%c0, %c0_0] : memref<64x256xbf16, #tpu.memory_space<vmem>>, vector<64x256xbf16>
    %c0_1 = arith.constant 0 : index
    %c0_2 = arith.constant 0 : index
    %1 = vector.load %arg2[%c0_1, %c0_2] : memref<256x128xbf16, #tpu.memory_space<vmem>>, vector<256x128xbf16>
    %cst = arith.constant dense<0.000000e+00> : vector<64x128xf32>
    %2 = tpu.matmul %0, %1, %cst {dimension_numbers = #tpu.dot_dimension_numbers<[1], [0], [0], [1], [0, 0, 1, 1], [], []>} : vector<64x256xbf16>, vector<256x128xbf16>, vector<64x128xf32> -> vector<64x128xf32>
    %c0_3 = arith.constant 0 : index
    %c0_4 = arith.constant 0 : index
    %3 = vector.load %arg3[%c0_3, %c0_4] : memref<1x128xf32, #tpu.memory_space<vmem>>, vector<1x128xf32>
    %4 = vector.broadcast %3 : vector<1x128xf32> to vector<64x128xf32>
    %5 = arith.addf %2, %4 : vector<64x128xf32>
    %6 = arith.truncf %5 : vector<64x128xf32> to vector<64x128xbf16>
    %c0_5 = arith.constant 0 : index
    %c0_6 = arith.constant 0 : index
    %7 = vector.load %arg4[%c0_5, %c0_6] : memref<64x128xbf16, #tpu.memory_space<vmem>>, vector<64x128xbf16>
    tpu.vector_store %arg4[%c0_5, %c0_6], %6 {strides = array<i32>} : memref<64x128xbf16, #tpu.memory_space<vmem>>, vector<64x128xbf16>,
    return
  }
  func.func @transform_0(%arg0: i32) -> (i32, i32) {
    %c0_i32 = arith.constant 0 : i32
    %c0_i32_0 = arith.constant 0 : i32
    return %arg0, %c0_i32 : i32, i32
  }
  func.func @transform_1(%arg0: i32) -> (i32, i32) {
    %c0_i32 = arith.constant 0 : i32
    %c0_i32_0 = arith.constant 0 : i32
    %c0_i32_1 = arith.constant 0 : i32
    return %c0_i32, %c0_i32_0 : i32, i32
  }
  func.func @transform_2(%arg0: i32) -> (i32, i32) {
    %c0_i32 = arith.constant 0 : i32
    %c0_i32_0 = arith.constant 0 : i32
    %c0_i32_1 = arith.constant 0 : i32
    return %c0_i32, %c0_i32_0 : i32, i32
  }
  func.func @transform_3(%arg0: i32) -> (i32, i32) {
    %c0_i32 = arith.constant 0 : i32
    %c0_i32_0 = arith.constant 0 : i32
    return %arg0, %c0_i32 : i32, i32
  }
}

module attributes {stable_mosaic.version = 11 : i64} {
  func.func @_attn_gru_kernel(%arg0: memref<8x128xf32, #tpu.memory_space<vmem>>, %arg1: memref<8x128xf32, #tpu.memory_space<vmem>>, %arg2: memref<8x8x256xbf16, #tpu.memory_space<vmem>>, %arg3: memref<8x8x128xbf16, #tpu.memory_space<vmem>>, %arg4: memref<8x8xf32, #tpu.memory_space<vmem>>, %arg5: memref<128x128xbf16, #tpu.memory_space<vmem>>, %arg6: memref<1x128xf32, #tpu.memory_space<vmem>>, %arg7: memref<1x128xf32, #tpu.memory_space<vmem>>, %arg8: memref<128x384xbf16, #tpu.memory_space<vmem>>, %arg9: memref<256x384xbf16, #tpu.memory_space<vmem>>, %arg10: memref<1x384xf32, #tpu.memory_space<vmem>>, %arg11: memref<128x384xbf16, #tpu.memory_space<vmem>>, %arg12: memref<1x384xf32, #tpu.memory_space<vmem>>, %arg13: memref<8x128xf32, #tpu.memory_space<vmem>>, %arg14: memref<8x128xbf16, #tpu.memory_space<vmem>>) attributes {dimension_semantics = [], scalar_prefetch = 0 : i64, scratch_operands = 0 : i64, tpu.core_type = #tpu.core_type<tc>} {
    %c0 = arith.constant 0 : index
    %c0_0 = arith.constant 0 : index
    %0 = vector.load %arg0[%c0, %c0_0] : memref<8x128xf32, #tpu.memory_space<vmem>>, vector<8x128xf32>
    %c0_1 = arith.constant 0 : index
    %c0_2 = arith.constant 0 : index
    %1 = vector.load %arg1[%c0_1, %c0_2] : memref<8x128xf32, #tpu.memory_space<vmem>>, vector<8x128xf32>
    %c0_3 = arith.constant 0 : index
    %c0_4 = arith.constant 0 : index
    %c0_5 = arith.constant 0 : index
    %2 = vector.load %arg2[%c0_3, %c0_4, %c0_5] : memref<8x8x256xbf16, #tpu.memory_space<vmem>>, vector<8x8x256xbf16>
    %3 = arith.extf %2 : vector<8x8x256xbf16> to vector<8x8x256xf32>
    %c0_6 = arith.constant 0 : index
    %c0_7 = arith.constant 0 : index
    %c0_8 = arith.constant 0 : index
    %4 = vector.load %arg3[%c0_6, %c0_7, %c0_8] : memref<8x8x128xbf16, #tpu.memory_space<vmem>>, vector<8x8x128xbf16>
    %5 = arith.extf %4 : vector<8x8x128xbf16> to vector<8x8x128xf32>
    %6 = arith.truncf %1 : vector<8x128xf32> to vector<8x128xbf16>
    %c0_9 = arith.constant 0 : index
    %c0_10 = arith.constant 0 : index
    %7 = vector.load %arg5[%c0_9, %c0_10] : memref<128x128xbf16, #tpu.memory_space<vmem>>, vector<128x128xbf16>
    %cst = arith.constant dense<0.000000e+00> : vector<8x128xf32>
    %8 = tpu.matmul %6, %7, %cst {dimension_numbers = #tpu.dot_dimension_numbers<[1], [0], [0], [1], [0, 0, 1, 1], [], []>} : vector<8x128xbf16>, vector<128x128xbf16>, vector<8x128xf32> -> vector<8x128xf32>
    %c0_11 = arith.constant 0 : index
    %c0_12 = arith.constant 0 : index
    %9 = vector.load %arg6[%c0_11, %c0_12] : memref<1x128xf32, #tpu.memory_space<vmem>>, vector<1x128xf32>
    %10 = vector.broadcast %9 : vector<1x128xf32> to vector<8x128xf32>
    %11 = arith.addf %8, %10 : vector<8x128xf32>
    %12 = vector.shape_cast %11 : vector<8x128xf32> to vector<8x1x128xf32>
    %13 = vector.broadcast %12 : vector<8x1x128xf32> to vector<8x8x128xf32>
    %14 = arith.addf %13, %5 : vector<8x8x128xf32>
    %15 = math.tanh %14 : vector<8x8x128xf32>
    %c0_13 = arith.constant 0 : index
    %c0_14 = arith.constant 0 : index
    %16 = vector.load %arg7[%c0_13, %c0_14] : memref<1x128xf32, #tpu.memory_space<vmem>>, vector<1x128xf32>
    %17 = vector.shape_cast %16 : vector<1x128xf32> to vector<1x1x128xf32>
    %18 = vector.broadcast %17 : vector<1x1x128xf32> to vector<8x8x128xf32>
    %19 = arith.mulf %15, %18 : vector<8x8x128xf32>
    %cst_15 = arith.constant dense<0.000000e+00> : vector<8x8xf32>
    %20 = vector.multi_reduction <add>, %19, %cst_15 [2] : vector<8x8x128xf32> to vector<8x8xf32>
    %c0_16 = arith.constant 0 : index
    %c0_17 = arith.constant 0 : index
    %21 = vector.load %arg4[%c0_16, %c0_17] : memref<8x8xf32, #tpu.memory_space<vmem>>, vector<8x8xf32>
    %22 = arith.addf %20, %21 : vector<8x8xf32>
    %cst_18 = arith.constant dense<0xFF800000> : vector<8xf32>
    %23 = vector.multi_reduction <maximumf>, %22, %cst_18 [1] : vector<8x8xf32> to vector<8xf32>
    %24 = vector.shape_cast %23 : vector<8xf32> to vector<8x1xf32>
    %25 = vector.broadcast %24 : vector<8x1xf32> to vector<8x8xf32>
    %26 = arith.subf %22, %25 : vector<8x8xf32>
    %27 = math.exp %26 : vector<8x8xf32>
    %cst_19 = arith.constant dense<0.000000e+00> : vector<8xf32>
    %28 = vector.multi_reduction <add>, %27, %cst_19 [1] : vector<8x8xf32> to vector<8xf32>
    %29 = vector.shape_cast %28 : vector<8xf32> to vector<8x1xf32>
    %30 = vector.broadcast %29 : vector<8x1xf32> to vector<8x8xf32>
    %31 = arith.divf %27, %30 : vector<8x8xf32>
    %32 = vector.shape_cast %31 : vector<8x8xf32> to vector<8x8x1xf32>
    %33 = vector.broadcast %32 : vector<8x8x1xf32> to vector<8x8x256xf32>
    %34 = arith.mulf %33, %3 : vector<8x8x256xf32>
    %cst_20 = arith.constant dense<0.000000e+00> : vector<8x256xf32>
    %35 = vector.multi_reduction <add>, %34, %cst_20 [1] : vector<8x8x256xf32> to vector<8x256xf32>
    %36 = arith.truncf %0 : vector<8x128xf32> to vector<8x128xbf16>
    %c0_21 = arith.constant 0 : index
    %c0_22 = arith.constant 0 : index
    %37 = vector.load %arg8[%c0_21, %c0_22] : memref<128x384xbf16, #tpu.memory_space<vmem>>, vector<128x384xbf16>
    %cst_23 = arith.constant dense<0.000000e+00> : vector<8x384xf32>
    %38 = tpu.matmul %36, %37, %cst_23 {dimension_numbers = #tpu.dot_dimension_numbers<[1], [0], [0], [1], [0, 0, 1, 1], [], []>} : vector<8x128xbf16>, vector<128x384xbf16>, vector<8x384xf32> -> vector<8x384xf32>
    %39 = arith.truncf %35 : vector<8x256xf32> to vector<8x256xbf16>
    %c0_24 = arith.constant 0 : index
    %c0_25 = arith.constant 0 : index
    %40 = vector.load %arg9[%c0_24, %c0_25] : memref<256x384xbf16, #tpu.memory_space<vmem>>, vector<256x384xbf16>
    %cst_26 = arith.constant dense<0.000000e+00> : vector<8x384xf32>
    %41 = tpu.matmul %39, %40, %cst_26 {dimension_numbers = #tpu.dot_dimension_numbers<[1], [0], [0], [1], [0, 0, 1, 1], [], []>} : vector<8x256xbf16>, vector<256x384xbf16>, vector<8x384xf32> -> vector<8x384xf32>
    %42 = arith.addf %38, %41 : vector<8x384xf32>
    %c0_27 = arith.constant 0 : index
    %c0_28 = arith.constant 0 : index
    %43 = vector.load %arg10[%c0_27, %c0_28] : memref<1x384xf32, #tpu.memory_space<vmem>>, vector<1x384xf32>
    %44 = vector.broadcast %43 : vector<1x384xf32> to vector<8x384xf32>
    %45 = arith.addf %42, %44 : vector<8x384xf32>
    %46 = arith.truncf %1 : vector<8x128xf32> to vector<8x128xbf16>
    %c0_29 = arith.constant 0 : index
    %c0_30 = arith.constant 0 : index
    %47 = vector.load %arg11[%c0_29, %c0_30] : memref<128x384xbf16, #tpu.memory_space<vmem>>, vector<128x384xbf16>
    %cst_31 = arith.constant dense<0.000000e+00> : vector<8x384xf32>
    %48 = tpu.matmul %46, %47, %cst_31 {dimension_numbers = #tpu.dot_dimension_numbers<[1], [0], [0], [1], [0, 0, 1, 1], [], []>} : vector<8x128xbf16>, vector<128x384xbf16>, vector<8x384xf32> -> vector<8x384xf32>
    %c0_32 = arith.constant 0 : index
    %c0_33 = arith.constant 0 : index
    %49 = vector.load %arg12[%c0_32, %c0_33] : memref<1x384xf32, #tpu.memory_space<vmem>>, vector<1x384xf32>
    %50 = vector.broadcast %49 : vector<1x384xf32> to vector<8x384xf32>
    %51 = arith.addf %48, %50 : vector<8x384xf32>
    %52 = vector.extract_strided_slice %45 {offsets = [0, 0], sizes = [8, 128], strides = [1, 1]} : vector<8x384xf32> to vector<8x128xf32>
    %53 = vector.extract_strided_slice %51 {offsets = [0, 0], sizes = [8, 128], strides = [1, 1]} : vector<8x384xf32> to vector<8x128xf32>
    %54 = arith.addf %52, %53 : vector<8x128xf32>
    %55 = arith.negf %54 : vector<8x128xf32>
    %56 = math.exp %55 : vector<8x128xf32>
    %cst_34 = arith.constant 1.000000e+00 : f32
    %57 = vector.broadcast %cst_34 : f32 to vector<8x128xf32>
    %58 = arith.addf %57, %56 : vector<8x128xf32>
    %59 = arith.divf %57, %58 : vector<8x128xf32>
    %60 = vector.extract_strided_slice %45 {offsets = [0, 128], sizes = [8, 128], strides = [1, 1]} : vector<8x384xf32> to vector<8x128xf32>
    %61 = vector.extract_strided_slice %51 {offsets = [0, 128], sizes = [8, 128], strides = [1, 1]} : vector<8x384xf32> to vector<8x128xf32>
    %62 = arith.addf %60, %61 : vector<8x128xf32>
    %63 = arith.negf %62 : vector<8x128xf32>
    %64 = math.exp %63 : vector<8x128xf32>
    %cst_35 = arith.constant 1.000000e+00 : f32
    %65 = vector.broadcast %cst_35 : f32 to vector<8x128xf32>
    %66 = arith.addf %65, %64 : vector<8x128xf32>
    %67 = arith.divf %65, %66 : vector<8x128xf32>
    %68 = vector.extract_strided_slice %45 {offsets = [0, 256], sizes = [8, 128], strides = [1, 1]} : vector<8x384xf32> to vector<8x128xf32>
    %69 = vector.extract_strided_slice %51 {offsets = [0, 256], sizes = [8, 128], strides = [1, 1]} : vector<8x384xf32> to vector<8x128xf32>
    %70 = arith.mulf %59, %69 : vector<8x128xf32>
    %71 = arith.addf %68, %70 : vector<8x128xf32>
    %72 = math.tanh %71 : vector<8x128xf32>
    %cst_36 = arith.constant 1.000000e+00 : f32
    %73 = vector.broadcast %cst_36 : f32 to vector<8x128xf32>
    %74 = arith.subf %73, %67 : vector<8x128xf32>
    %75 = arith.mulf %74, %72 : vector<8x128xf32>
    %76 = arith.mulf %67, %1 : vector<8x128xf32>
    %77 = arith.addf %75, %76 : vector<8x128xf32>
    %c0_37 = arith.constant 0 : index
    %c0_38 = arith.constant 0 : index
    %78 = vector.load %arg13[%c0_37, %c0_38] : memref<8x128xf32, #tpu.memory_space<vmem>>, vector<8x128xf32>
    tpu.vector_store %arg13[%c0_37, %c0_38], %77 {strides = array<i32>} : memref<8x128xf32, #tpu.memory_space<vmem>>, vector<8x128xf32>,
    %79 = arith.truncf %77 : vector<8x128xf32> to vector<8x128xbf16>
    %c0_39 = arith.constant 0 : index
    %c0_40 = arith.constant 0 : index
    %80 = vector.load %arg14[%c0_39, %c0_40] : memref<8x128xbf16, #tpu.memory_space<vmem>>, vector<8x128xbf16>
    tpu.vector_store %arg14[%c0_39, %c0_40], %79 {strides = array<i32>} : memref<8x128xbf16, #tpu.memory_space<vmem>>, vector<8x128xbf16>,
    return
  }
}

module attributes {stable_mosaic.version = 11 : i64} {
  func.func @_vocab_proj_kernel(%arg0: i32, %arg1: memref<8x128xbf16, #tpu.memory_space<vmem>>, %arg2: memref<128x128xbf16, #tpu.memory_space<vmem>>, %arg3: memref<1x128xf32, #tpu.memory_space<vmem>>, %arg4: memref<8x128xf32, #tpu.memory_space<vmem>>) attributes {dimension_semantics = [#tpu.dimension_semantics<parallel>], iteration_bounds = array<i64: 1>, scalar_prefetch = 0 : i64, scratch_operands = 0 : i64, tpu.core_type = #tpu.core_type<tc>, window_params = [{pipeline_mode = #tpu.pipeline_mode<synchronous>, transform_indices = @transform_0, window_bounds = array<i64: 8, 128>}, {transform_indices = @transform_1, window_bounds = array<i64: 128, 128>}, {transform_indices = @transform_2, window_bounds = array<i64: 1, 128>}, {transform_indices = @transform_3, window_bounds = array<i64: 8, 128>}]} {
    %c0 = arith.constant 0 : index
    %c0_0 = arith.constant 0 : index
    %0 = vector.load %arg1[%c0, %c0_0] : memref<8x128xbf16, #tpu.memory_space<vmem>>, vector<8x128xbf16>
    %c0_1 = arith.constant 0 : index
    %c0_2 = arith.constant 0 : index
    %1 = vector.load %arg2[%c0_1, %c0_2] : memref<128x128xbf16, #tpu.memory_space<vmem>>, vector<128x128xbf16>
    %cst = arith.constant dense<0.000000e+00> : vector<8x128xf32>
    %2 = tpu.matmul %0, %1, %cst {dimension_numbers = #tpu.dot_dimension_numbers<[1], [0], [0], [1], [0, 0, 1, 1], [], []>} : vector<8x128xbf16>, vector<128x128xbf16>, vector<8x128xf32> -> vector<8x128xf32>
    %c0_3 = arith.constant 0 : index
    %c0_4 = arith.constant 0 : index
    %3 = vector.load %arg3[%c0_3, %c0_4] : memref<1x128xf32, #tpu.memory_space<vmem>>, vector<1x128xf32>
    %4 = vector.broadcast %3 : vector<1x128xf32> to vector<8x128xf32>
    %5 = arith.addf %2, %4 : vector<8x128xf32>
    %c0_5 = arith.constant 0 : index
    %c0_6 = arith.constant 0 : index
    %6 = vector.load %arg4[%c0_5, %c0_6] : memref<8x128xf32, #tpu.memory_space<vmem>>, vector<8x128xf32>
    tpu.vector_store %arg4[%c0_5, %c0_6], %5 {strides = array<i32>} : memref<8x128xf32, #tpu.memory_space<vmem>>, vector<8x128xf32>,
    return
  }
  func.func @transform_0(%arg0: i32) -> (i32, i32) {
    %c0_i32 = arith.constant 0 : i32
    %c0_i32_0 = arith.constant 0 : i32
    %c0_i32_1 = arith.constant 0 : i32
    return %c0_i32, %c0_i32_0 : i32, i32
  }
  func.func @transform_1(%arg0: i32) -> (i32, i32) {
    %c0_i32 = arith.constant 0 : i32
    %c0_i32_0 = arith.constant 0 : i32
    return %c0_i32, %arg0 : i32, i32
  }
  func.func @transform_2(%arg0: i32) -> (i32, i32) {
    %c0_i32 = arith.constant 0 : i32
    %c0_i32_0 = arith.constant 0 : i32
    return %c0_i32, %arg0 : i32, i32
  }
  func.func @transform_3(%arg0: i32) -> (i32, i32) {
    %c0_i32 = arith.constant 0 : i32
    %c0_i32_0 = arith.constant 0 : i32
    return %c0_i32, %arg0 : i32, i32
  }
}

</mosaic_0001>

<bundles_post_ra>
// kernel: decoder_forward.5
= control target key start
LH: loop header
LB: loop body
LE: loop exit
PB: predicated region body
PF: predicated region fallthrough
CT: control target
= control target key end

     0   :  { %v180_v0 = vmov 0.0   ;;  %vm181_vm0 = vmmov 0   ;;  %s235_s1 = inlined_call_operand.vmem [shape: bf16[128,128], index: 1, kind: input, shape index: {}]   ;;  %s236_s0 = inlined_call_operand.vmem [shape: bf16[8,128], index: 0, kind: input, shape index: {}]   ;;  %s237_s2 = inlined_call_operand.vmem [shape: f32[1,128], index: 2, kind: input, shape index: {}]   ;;  %s238_s3 = inlined_call_operand.vmem [shape: f32[8,128], index: 3, kind: output, shape index: {}]  }
   0x1   :  { %150 = vmatprep.subr.bf16.mxu0 %v180_v0  ;;  %v172_v1 = vld [vmem:[%s235_s1 + $0x38] sm:$0xff]   ;;  %166 = vmatprep.mubr.msk.bf16.mxu0 %vm181_vm0, %v180_v0  ;;  %v173_v2 = vld [vmem:[%s235_s1 + $0x30] sm:$0xff]   ;;  %v174_v3 = vld [vmem:[%s235_s1 + $0x28] sm:$0xff]  }
   0x2   :  { %151 = vmatpush3.bf16.msra.mxu0 %v172_v1  ;;  %v175_v4 = vld [vmem:[%s235_s1 + $0x20] sm:$0xff]   ;;  %v176_v5 = vld [vmem:[%s235_s1 + $0x18] sm:$0xff]   ;;  %v177_v6 = vld [vmem:[%s235_s1 + $0x10] sm:$0xff]  }
   0x3   :  { %152 = vmatprep.subr.bf16.mxu0 %v180_v0  ;;  %v178_v7 = vld [vmem:[%s235_s1 + $0x8] sm:$0xff]   ;;  %v179_v8 = vld [vmem:[%s235_s1] sm:$0xff]  }
   0x4   :  { %v15_v9 = vld [vmem:[%s236_s0] sm:$0xf] }
   0x5   :  { %v132_v10 = vld [vmem:[%s237_s2] ss:$0 sm:$0xff] }
   0x6   :  { %153 = vmatpush3.bf16.msra.mxu0 %v173_v2 }
   0x7   :  { %154 = vmatprep.subr.bf16.mxu0 %v180_v0 }
   0xa   :  { %155 = vmatpush3.bf16.msra.mxu0 %v174_v3 }
   0xb   :  { %156 = vmatprep.subr.bf16.mxu0 %v180_v0 }
   0xe   :  { %157 = vmatpush3.bf16.msra.mxu0 %v175_v4 }
   0xf   :  { %158 = vmatprep.subr.bf16.mxu0 %v180_v0 }
  0x12   :  { %159 = vmatpush3.bf16.msra.mxu0 %v176_v5 }
  0x13   :  { %160 = vmatprep.subr.bf16.mxu0 %v180_v0 }
  0x16   :  { %161 = vmatpush3.bf16.msra.mxu0 %v177_v6 }
  0x17   :  { %162 = vmatprep.subr.bf16.mxu0 %v180_v0 }
  0x1a   :  { %163 = vmatpush3.bf16.msra.mxu0 %v178_v7 }
  0x1b   :  { %164 = vmatprep.subr.bf16.mxu0 %v180_v0 }
  0x1e   :  { %165 = vmatpush3.bf16.msra.mxu0 %v179_v8 }
  0x21   :  { %167 = vmatmul.mubr.bf16.vlgmr.msra.gmra.mxu0 %v15_v9 }
  0xe1   :  { %v121_v11 = vpop.f32.mrf.mxu0 }
  0xe2   :  { %v122_v12 = vadd.f32 %v132_v10, %v121_v11 }
  0xe3   :  { %v168_v13 = vpop.f32.mrf.mxu0 }
  0xe4   :  { %127 = vst [vmem:[%s238_s3] sm:$0xff] %v122_v12 }
  0xe5   :  { %v124_v14 = vpop.f32.mrf.mxu0 }
  0xe7   :  { %v169_v15 = vpop.f32.mrf.mxu0 }

// kernel: decoder_forward.3
= control target key start
LH: loop header
LB: loop body
LE: loop exit
PB: predicated region body
PF: predicated region fallthrough
CT: control target
= control target key end

     0   :  { %8 = vsyncpa [#allocation3], 0  ;;  %s495_s12 = smov [#allocation2]   ;;  %s560_s0 = inlined_call_operand.vmem [shape: bf16[64,256], index: 0, kind: input, shape index: {}]   ;;  %s561_s1 = inlined_call_operand.hbm [shape: bf16[256,128], index: 1, kind: input, shape index: {}]   ;;  %s562_s2 = inlined_call_operand.vmem [shape: f32[1,128], index: 2, kind: input, shape index: {}]   ;;  %s563_s3 = inlined_call_operand.vmem [shape: bf16[64,128], index: 3, kind: output, shape index: {}]  }
   0x1   :  { %s16_s13 = sshll.u32 %s495_s12, 4  ;;  %s17_s13 = int_to_ptr.vmem [resolvable:$true] %s16_s13 }
   0x2   :  { %s481_s14 = scalar_lea.vmem %s17_s13, 2048  ;;  %p486_p1 = scmp.lt.s32.totalorder %s17_s13, %s17_s13 }
   0x3   :  { %p482_p0 = scmp.ne.s32.totalorder %s17_s13, %s481_s14  ;;  %p487_p2 = scmp.lt.s32.totalorder %s481_s14, %s481_s14 }
   0x5   :  { %p488_p3 = por %p487_p2, %p486_p1 }
   0x7   :  { %p489_p4 = pnand %p488_p3, %p482_p0 }
   0x9   :  { %492 = shalt.err (!%p489_p4)
}
   0xa   :  { %s496_s15 = smov 64   ;;  %s497_s16 = smov 4  }
   0xb   :  { %22 = dma.hbm_to_vmem [thread:$0]  %s561_s1, 2048, %s17_s13, [#allocation3], %s496_s15, %s496_s15, %s497_s16  }
   0xc   :  { %493 = dma.done.wait [#allocation3], 2048  }
   0xd   :  { %494 = vsyncadd [#allocation3], 4294965248  ;;  %v445_v0 = vld [vmem:[#allocation2 + $0x78] sm:$0xff]   ;;  %v447_v2 = vld [vmem:[#allocation2 + $0x70] sm:$0xff]  }
   0xe   :  { %v446_v1 = vld [vmem:[#allocation2 + $0x38] sm:$0xff]   ;;  %386 = vmatprep.subr.bf16.mxu0 %v445_v0  ;;  %426 = vmatprep.subr.bf16.mxu1 %v445_v0  ;;  %v448_v3 = vld [vmem:[#allocation2 + $0x30] sm:$0xff]   ;;  %v449_v4 = vld [vmem:[#allocation2 + $0x68] sm:$0xff]  }
   0xf   :  { %387 = vmatpush3.bf16.msra.mxu0 %v446_v1  ;;  %434 = vmatpush3.bf16.msra.mxu1 %v446_v1  ;;  %v450_v5 = vld [vmem:[#allocation2 + $0x28] sm:$0xff]   ;;  %v451_v6 = vld [vmem:[#allocation2 + $0x60] sm:$0xff]   ;;  %v453_v8 = vld [vmem:[#allocation2 + $0x58] sm:$0xff]  }
  0x10   :  { %388 = vmatprep.subr.bf16.mxu0 %v447_v2  ;;  %427 = vmatprep.subr.bf16.mxu1 %v447_v2  ;;  %v452_v7 = vld [vmem:[#allocation2 + $0x20] sm:$0xff]   ;;  %v454_v9 = vld [vmem:[#allocation2 + $0x18] sm:$0xff]   ;;  %v455_v10 = vld [vmem:[#allocation2 + $0x50] sm:$0xff]  }
  0x11   :  { %v463_v11 = vld [vmem:[%s560_s0 + $0x4] ss:$8 sps:$4 sm:$0xff]   ;;  %v456_v13 = vld [vmem:[#allocation2 + $0x10] sm:$0xff]   ;;  %v461_v18 = vld [vmem:[%s560_s0] ss:$8 sps:$4 sm:$0xff]  }
  0x12   :  { %v466_v12 = vld [vmem:[%s560_s0 + $0x24] ss:$8 sps:$4 sm:$0xff]   ;;  %244 = vmatprep.mubr.bf16.mxu0 %v463_v11  ;;  %v464_v19 = vld [vmem:[%s560_s0 + $0x20] ss:$8 sps:$4 sm:$0xff]   ;;  %v467_v20 = vld [vmem:[%s560_s0 + $0x14] ss:$8 sps:$4 sm:$0xff]  }
  0x13   :  { %389 = vmatpush3.bf16.msra.mxu0 %v448_v3  ;;  %435 = vmatpush3.bf16.msra.mxu1 %v448_v3  ;;  %v457_v14 = vld [vmem:[#allocation2 + $0x48] sm:$0xff]   ;;  %v459_v16 = vld [vmem:[#allocation2 + $0x40] sm:$0xff]   ;;  %v469_v21 = vld [vmem:[%s560_s0 + $0x34] ss:$8 sps:$4 sm:$0xff]  }
  0x14   :  { %390 = vmatprep.subr.bf16.mxu0 %v449_v4  ;;  %428 = vmatprep.subr.bf16.mxu1 %v449_v4  ;;  %v458_v15 = vld [vmem:[#allocation2 + $0x8] sm:$0xff]   ;;  %v460_v17 = vld [vmem:[#allocation2] sm:$0xff]   ;;  %v471_v22 = vld [vmem:[%s560_s0 + $0x10] ss:$8 sps:$4 sm:$0xff]  }
  0x15   :  { %260 = vmatprep.mubr.bf16.mxu1 %v466_v12  ;;  %v472_v23 = vld [vmem:[%s560_s0 + $0x30] ss:$8 sps:$4 sm:$0xff]   ;;  %v322_v32 = vld [vmem:[%s562_s2] ss:$0 sm:$0xff] }
  0x17   :  { %391 = vmatpush3.bf16.msra.mxu0 %v450_v5  ;;  %436 = vmatpush3.bf16.msra.mxu1 %v450_v5 }
  0x18   :  { %392 = vmatprep.subr.bf16.mxu0 %v451_v6  ;;  %429 = vmatprep.subr.bf16.mxu1 %v451_v6 }
  0x1b   :  { %393 = vmatpush3.bf16.msra.mxu0 %v452_v7  ;;  %437 = vmatpush3.bf16.msra.mxu1 %v452_v7 }
  0x1c   :  { %394 = vmatprep.subr.bf16.mxu0 %v453_v8  ;;  %430 = vmatprep.subr.bf16.mxu1 %v453_v8 }
  0x1f   :  { %395 = vmatpush3.bf16.msra.mxu0 %v454_v9  ;;  %438 = vmatpush3.bf16.msra.mxu1 %v454_v9 }
  0x20   :  { %396 = vmatprep.subr.bf16.mxu0 %v455_v10  ;;  %431 = vmatprep.subr.bf16.mxu1 %v455_v10 }
  0x23   :  { %397 = vmatpush3.bf16.msra.mxu0 %v456_v13  ;;  %439 = vmatpush3.bf16.msra.mxu1 %v456_v13 }
  0x24   :  { %398 = vmatprep.subr.bf16.mxu0 %v457_v14  ;;  %432 = vmatprep.subr.bf16.mxu1 %v457_v14 }
  0x27   :  { %399 = vmatpush3.bf16.msra.mxu0 %v458_v15  ;;  %440 = vmatpush3.bf16.msra.mxu1 %v458_v15 }
  0x28   :  { %400 = vmatprep.subr.bf16.mxu0 %v459_v16  ;;  %433 = vmatprep.subr.bf16.mxu1 %v459_v16 }
  0x2b   :  { %401 = vmatpush3.bf16.msra.mxu0 %v460_v17  ;;  %441 = vmatpush3.bf16.msra.mxu1 %v460_v17 }
  0x2e   :  { %245 = vmatmul.mubr.bf16.vlgmr.msra.gmra.mxu0 %v461_v18  ;;  %261 = vmatmul.mubr.bf16.vlgmr.msra.gmra.mxu1 %v464_v19 }
  0x2f   :  { %252 = vmatprep.mubr.bf16.mxu0 %v467_v20  ;;  %268 = vmatprep.mubr.bf16.mxu1 %v469_v21 }
  0x36   :  { %253 = vmatmul.mubr.bf16.gmra.mxu0 %v471_v22  ;;  %269 = vmatmul.mubr.bf16.gmra.mxu1 %v472_v23 }
  0xee   :  { %v402_v24 = vpop.f32.mrf.mxu0  ;;  %v414_v25 = vpop.f32.mrf.mxu1 }
  0xf0   :  { %v403_v26 = vpop.f32.mrf.mxu0  ;;  %v415_v27 = vpop.f32.mrf.mxu1 }
  0xf1   :  { %v404_v30 = vadd.f32 %v403_v26, %v402_v24  ;;  %v416_v31 = vadd.f32 %v415_v27, %v414_v25 }
  0xf2   :  { %v405_v28 = vpop.f32.mrf.mxu0  ;;  %v417_v29 = vpop.f32.mrf.mxu1 }
  0xf3   :  { %v247_v39 = vadd.f32 %v404_v30, %v322_v32  ;;  %v263_v40 = vadd.f32 %v416_v31, %v322_v32 }
  0xf4   :  { %v406_v33 = vpop.f32.mrf.mxu0  ;;  %v418_v34 = vpop.f32.mrf.mxu1 }
  0xf5   :  { %v407_v35 = vadd.f32 %v406_v33, %v405_v28  ;;  %v419_v36 = vadd.f32 %v418_v34, %v417_v29 }
  0xf6   :  { %v408_v37 = vpop.f32.mrf.mxu0  ;;  %v420_v38 = vpop.f32.mrf.mxu1 }
  0xf7   :  { %v250_v41 = vadd.f32 %v407_v35, %v322_v32  ;;  %v266_v42 = vadd.f32 %v419_v36, %v322_v32 }
  0xf8   :  { %v409_v43 = vpop.f32.mrf.mxu0  ;;  %v421_v44 = vpop.f32.mrf.mxu1 }
  0xf9   :  { %v366_v45 = vpack.c.bf16 %v250_v41, %v247_v39  ;;  %v376_v46 = vpack.c.bf16 %v266_v42, %v263_v40  ;;  %v410_v49 = vadd.f32 %v409_v43, %v408_v37  ;;  %v422_v50 = vadd.f32 %v421_v44, %v420_v38 }
  0xfa   :  { %v411_v47 = vpop.f32.mrf.mxu0  ;;  %v423_v48 = vpop.f32.mrf.mxu1 }
  0xfb   :  { %367 = vst [vmem:[%s563_s3] sm:$0xff] %v366_v45   ;;  %384 = vst [vmem:[%s563_s3 + $0x10] sm:$0xff] %v376_v46   ;;  %v255_v55 = vadd.f32 %v410_v49, %v322_v32  ;;  %v271_v56 = vadd.f32 %v422_v50, %v322_v32 }
  0xfc   :  { %v412_v51 = vpop.f32.mrf.mxu0  ;;  %v424_v52 = vpop.f32.mrf.mxu1 }
  0xfd   :  { %v413_v53 = vadd.f32 %v412_v51, %v411_v47  ;;  %v425_v54 = vadd.f32 %v424_v52, %v423_v48 }
  0xff   :  { %v258_v57 = vadd.f32 %v413_v53, %v322_v32  ;;  %v274_v58 = vadd.f32 %v425_v54, %v322_v32 }
 0x101   :  { %v371_v59 = vpack.c.bf16 %v258_v57, %v255_v55  ;;  %v381_v60 = vpack.c.bf16 %v274_v58, %v271_v56 }
 0x103   :  { %383 = vst [vmem:[%s563_s3 + $0x8] sm:$0xff] %v371_v59   ;;  %385 = vst [vmem:[%s563_s3 + $0x18] sm:$0xff] %v381_v60  }
 0x104   :  { %321 = vsyncpa [#allocation3], 1 }

// kernel: decoder_forward.4
= control target key start
LH: loop header
LB: loop body
LE: loop exit
PB: predicated region body
PF: predicated region fallthrough
CT: control target
= control target key end

     0   :  { %20 = vsyncpa [#allocation3], 0  ;;  %s2941_s0 = inlined_call_operand.vmem [shape: f32[8,128], index: 0, kind: input, shape index: {}]   ;;  %s2942_s1 = inlined_call_operand.vmem [shape: f32[8,128], index: 1, kind: input, shape index: {}]   ;;  %s2943_s2 = inlined_call_operand.vmem [shape: bf16[8,8,256], index: 2, kind: input, shape index: {}]   ;;  %s2944_s3 = inlined_call_operand.vmem [shape: bf16[8,8,128], index: 3, kind: input, shape index: {}]   ;;  %s2945_s4 = inlined_call_operand.vmem [shape: f32[8,8], index: 4, kind: input, shape index: {}]   ;;  %s2946_s5 = inlined_call_operand.vmem [shape: bf16[128,128], index: 5, kind: input, shape index: {}]   ;;  %s2947_s6 = inlined_call_operand.vmem [shape: f32[1,128], index: 6, kind: input, shape index: {}]   ;;  %s2948_s7 = inlined_call_operand.vmem [shape: f32[1,128], index: 7, kind: input, shape index: {}]   ;;  %s2949_s8 = inlined_call_operand.hbm [shape: bf16[128,384], index: 8, kind: input, shape index: {}]   ;;  %s2950_s9 = inlined_call_operand.vmem [shape: bf16[256,384], index: 9, kind: input, shape index: {}]   ;;  %s2951_s10 = inlined_call_operand.vmem [shape: f32[1,384], index: 10, kind: input, shape index: {}]   ;;  %s2952_s11 = inlined_call_operand.hbm [shape: bf16[128,384], index: 11, kind: input, shape index: {}]   ;;  %s2953_s12 = inlined_call_operand.vmem [shape: f32[1,384], index: 12, kind: input, shape index: {}]   ;;  %s2954_s13 = inlined_call_operand.vmem [shape: f32[8,128], index: 13, kind: output, shape index: {0}]   ;;  %s2955_s14 = inlined_call_operand.vmem [shape: bf16[8,128], index: 14, kind: output, shape index: {1}]  }
   0x1   :  { %21 = vsyncpa [#allocation5], 0  ;;  %s2380_s29 = smov [#allocation2]  }
   0x2   :  { %s43_s30 = sshll.u32 %s2380_s29, 4  ;;  %s44_s30 = int_to_ptr.vmem [resolvable:$true] %s43_s30 }
   0x3   :  { %s2344_s15 = scalar_lea.vmem %s44_s30, 3072  ;;  %p2349_p1 = scmp.lt.s32.totalorder %s44_s30, %s44_s30 }
   0x4   :  { %p2345_p0 = scmp.ne.s32.totalorder %s44_s30, %s2344_s15  ;;  %p2350_p2 = scmp.lt.s32.totalorder %s2344_s15, %s2344_s15 }
   0x6   :  { %p2351_p3 = por %p2350_p2, %p2349_p1 }
   0x8   :  { %p2352_p4 = pnand %p2351_p3, %p2345_p0 }
   0xa   :  { %2355 = shalt.err (!%p2352_p4)
}
   0xb   :  { %s2381_s16 = smov 192   ;;  %s2382_s17 = smov 12  }
   0xc   :  { %49 = dma.hbm_to_vmem [thread:$0]  %s2949_s8, 3072, %s44_s30, [#allocation3], %s2381_s16, %s2381_s16, %s2382_s17  }
   0xd   :  { %s2383_s20 = smov [#allocation4]  }
   0xe   :  { %s59_s21 = sshll.u32 %s2383_s20, 4  ;;  %s60_s21 = int_to_ptr.vmem [resolvable:$true] %s59_s21 }
   0xf   :  { %s2364_s22 = scalar_lea.vmem %s60_s21, 3072  ;;  %p2369_p6 = scmp.lt.s32.totalorder %s60_s21, %s60_s21 }
  0x10   :  { %p2365_p5 = scmp.ne.s32.totalorder %s60_s21, %s2364_s22  ;;  %p2370_p7 = scmp.lt.s32.totalorder %s2364_s22, %s2364_s22 }
  0x12   :  { %p2371_p8 = por %p2370_p7, %p2369_p6 }
  0x14   :  { %p2372_p9 = pnand %p2371_p8, %p2365_p5 }
  0x16   :  { %2375 = shalt.err (!%p2372_p9)
}
  0x17   :  { %65 = dma.hbm_to_vmem [thread:$0]  %s2952_s11, 3072, %s60_s21, [#allocation5], %s2381_s16, %s2381_s16, %s2382_s17  }
  0x18   :  { %2376 = dma.done.wait [#allocation3], 3072  }
  0x19   :  { %2377 = vsyncadd [#allocation3], 4294964224 }
  0x1a   :  { %2378 = dma.done.wait [#allocation5], 3072  }
  0x1b   :  { %2379 = vsyncadd [#allocation5], 4294964224  ;;  %v2384_v0 = vmov 0.0   ;;  %vm2385_vm0 = vmmov 0   ;;  %v234_v1 = vlaneseq  ;;  %v2141_v2 = vld [vmem:[%s2946_s5 + $0x38] sm:$0xff]   ;;  %v2142_v4 = vld [vmem:[%s2946_s5 + $0x30] sm:$0xff]  }
  0x1c   :  { %2071 = vmatprep.subr.bf16.mxu0 %v2384_v0  ;;  %2087 = vmatprep.mubr.msk.bf16.mxu0 %vm2385_vm0, %v2384_v0  ;;  %v2143_v6 = vld [vmem:[%s2946_s5 + $0x28] sm:$0xff]   ;;  %v2498_v9 = vld [vmem:[%s2945_s4] sm:$0xff]  ;;  %v2145_v16 = vld [vmem:[%s2946_s5 + $0x18] sm:$0xff]   ;;  %v2386_v26 = vmov 1966171168   ;;  %vm506_vm1 = vcmask 1041409  }
  0x1d   :  { %v2476_v3 = vshrl.u32 %v234_v1, 7  ;;  %2072 = vmatpush3.bf16.msra.mxu0 %v2141_v2  ;;  %v2144_v12 = vld [vmem:[%s2946_s5 + $0x20] sm:$0xff]   ;;  %v2146_v20 = vld [vmem:[%s2946_s5 + $0x10] sm:$0xff]   ;;  %v2147_v22 = vld [vmem:[%s2946_s5 + $0x8] sm:$0xff]   ;;  %v232_v27 = vunpack.c.l.s4 %v2386_v26  ;;  %vm508_vm2 = vcmask 1042434   ;;  %vm510_vm3 = vcmask 1043459  }
  0x1e   :  { %2073 = vmatprep.subr.bf16.mxu0 %v2384_v0  ;;  %v2148_v23 = vld [vmem:[%s2946_s5] sm:$0xff]   ;;  %v2019_v38 = vld [vmem:[%s2944_s3 + $0x8] sm:$0xff]   ;;  %v2020_v43 = vld [vmem:[%s2944_s3 + $0x10] sm:$0xff]   ;;  %vm512_vm4 = vcmask 1044484   ;;  %vm514_vm5 = vcmask 1045509   ;;  %vm516_vm6 = vcmask 1046534  }
  0x1f   :  { %v2483_v5 = vsub.s32 1, %v2476_v3  ;;  %v2489_v7 = vsub.s32 0, %v2476_v3  ;;  %v2493_v8 = vsub.s32 2, %v2476_v3  ;;  %v2501_v10 = vsub.s32 4, %v2476_v3  ;;  %v76_v24 = vld [vmem:[%s2942_s1] sm:$0xff]  ;;  %v2021_v61 = vld [vmem:[%s2944_s3 + $0x18] sm:$0xff]  }
  0x20   :  { %v2514_v15 = vsub.s32 3, %v2476_v3  ;;  %v2525_v19 = vsub.s32 5, %v2476_v3  ;;  %v2544_v25 = vpack.c.bf16 %v76_v24, %v76_v24  ;;  %v233_v28 = vunpack.c.0.s8 %v232_v27  ;;  %v1895_v29 = vld [vmem:[%s2947_s6] ss:$0 sm:$0xff] }
  0x21   :  { %2074 = vmatpush3.bf16.msra.mxu0 %v2142_v4  ;;  %v378_v11 = vrot.slane %v2498_v9, %v2483_v5  ;;  %v371_v13 = vrot.slane %v2498_v9, %v2489_v7  ;;  %v385_v14 = vrot.slane %v2498_v9, %v2493_v8  ;;  %v399_v17 = vrot.slane %v2498_v9, %v2501_v10  ;;  %v2004_v34 = vld [vmem:[%s2944_s3] sm:$0xff]  }
  0x22   :  { %2075 = vmatprep.subr.bf16.mxu0 %v2384_v0  ;;  %v392_v18 = vrot.slane %v2498_v9, %v2514_v15  ;;  %v406_v21 = vrot.slane %v2498_v9, %v2525_v19  ;;  %v236_v30 = vsub.s32 %v233_v28, %v2476_v3  ;;  %v2005_v42 = vunpack.c.l.bf16 %v2004_v34 }
  0x23   :  { %380 = vbcast.lane.b32.xlu1 %v378_v11, 256  ;;  %373 = vbcast.lane.b32.xlu0 %v371_v13, 256  ;;  %v2006_v49 = vunpack.c.h.bf16 %v2004_v34  ;;  %v2009_v50 = vunpack.c.l.bf16 %v2019_v38  ;;  %v2010_v51 = vunpack.c.h.bf16 %v2019_v38  ;;  %v2013_v53 = vunpack.c.l.bf16 %v2020_v43 }
  0x24   :  { %v2014_v4 = vunpack.c.h.bf16 %v2020_v43  ;;  %v2017_v13 = vunpack.c.l.bf16 %v2021_v61  ;;  %v2580_v43 = vsub.s32 6, %v2476_v3  ;;  %vm518_vm7 = vcmask 1047559  }
  0x25   :  { %2076 = vmatpush3.bf16.msra.mxu0 %v2143_v6  ;;  %vm521_vm8 = vcmask 64512  }
  0x26   :  { %2077 = vmatprep.subr.bf16.mxu0 %v2384_v0 }
  0x27   :  { %387 = vbcast.lane.b32.xlu1 %v385_v14, 256  ;;  %401 = vbcast.lane.b32.xlu0 %v399_v17, 256  ;;  %v2018_v17 = vunpack.c.h.bf16 %v2021_v61 }
  0x29   :  { %2078 = vmatpush3.bf16.msra.mxu0 %v2144_v12 }
  0x2a   :  { %2079 = vmatprep.subr.bf16.mxu0 %v2384_v0 }
  0x2b   :  { %394 = vbcast.lane.b32.xlu1 %v392_v18, 256 }
  0x2d   :  { %2080 = vmatpush3.bf16.msra.mxu0 %v2145_v16 }
  0x2e   :  { %2081 = vmatprep.subr.bf16.mxu0 %v2384_v0 }
  0x2f   :  { %408 = vbcast.lane.b32.xlu1 %v406_v21, 256 }
  0x31   :  { %2082 = vmatpush3.bf16.msra.mxu0 %v2146_v20 }
  0x32   :  { %2083 = vmatprep.subr.bf16.mxu0 %v2384_v0 }
  0x35   :  { %2084 = vmatpush3.bf16.msra.mxu0 %v2147_v22 }
  0x36   :  { %2085 = vmatprep.subr.bf16.mxu0 %v2384_v0 }
  0x39   :  { %2086 = vmatpush3.bf16.msra.mxu0 %v2148_v23  ;;  %v1904_v23 = vld [vmem:[%s2948_s7] ss:$0 sm:$0xff] }
  0x3c   :  { %2088 = vmatmul.mubr.bf16.vlgmr.msra.gmra.mxu0 %v2544_v25 }
  0xfc   :  { %v223_v31 = vpop.f32.mrf.mxu0 }
  0xfd   :  { %v224_v32 = vadd.f32 %v1895_v29, %v223_v31 }
  0xfe   :  { %v2089_v33 = vpop.f32.mrf.mxu0 }
  0xff   :  { %v230_v35 = vcombine.high %v224_v32, %v224_v32  ;;  %v237_v36 = vrot.slane %v224_v32, %v236_v30 }
 0x100   :  { %v226_v37 = vpop.f32.mrf.mxu0 }
 0x101   :  { %v244_v39 = vrot.slane %v230_v35, %v236_v30  ;;  %v245_v40 = vcombine.high %v237_v36, %v237_v36  ;;  %v253_v41 = vrot.slane %v237_v36, %v236_v30 }
 0x102   :  { %v2090_v44 = vpop.f32.mrf.mxu0 }
 0x103   :  { %v246_v45 = vcombine.high %v244_v39, %v244_v39  ;;  %v260_v46 = vrot.slane %v244_v39, %v236_v30  ;;  %v267_v47 = vrot.slane %v245_v40, %v236_v30  ;;  %v275_v48 = vcombine.high %v253_v41, %v253_v41 }
 0x104   :  { %v282_v52 = vrot.slane %v253_v41, %v2489_v7  ;;  %v2387_v40 = vmov 0  }
 0x105   :  { %v274_v54 = vrot.slane %v246_v45, %v236_v30  ;;  %v277_v55 = vcombine.high %v267_v47, %v267_v47  ;;  %v286_v56 = vrot.slane %v267_v47, %v2489_v7  ;;  %v276_v57 = vcombine.high %v260_v46, %v260_v46  ;;  %2139 = vset.pattern.permute.xlu0 %v2387_v40 }
 0x106   :  { %v290_v58 = vrot.slane %v275_v48, %v2489_v7  ;;  %v298_v59 = vrot.slane %v260_v46, %v2489_v7  ;;  %v319_v60 = vadd.f32 %v2005_v42, %v282_v52  ;;  %2140 = vset.pattern.permute.xlu1 %v2387_v40  ;;  %v2577_v42 = vsub.s32 7, %v2476_v3  ;;  %v381_v46 = vpop.permute.xlu1 %380  ;;  %v374_v48 = vpop.permute.xlu0 %373 }
 0x107   :  { %v294_v62 = vrot.slane %v277_v55, %v2489_v7  ;;  %v320_v63 = vadd.f32 %v2006_v49, %v286_v56  ;;  %v278_v6 = vcombine.high %v274_v54, %v274_v54  ;;  %v302_v11 = vrot.slane %v274_v54, %v2489_v7 }
 0x108   :  { %v321_v2 = vadd.f32 %v2009_v50, %v290_v58  ;;  %2277 = vtanh.f32 %v319_v60  ;;  %v306_v14 = vrot.slane %v276_v57, %v2489_v7  ;;  %v323_v16 = vadd.f32 %v2013_v53, %v298_v59 }
 0x109   :  { %v322_v12 = vadd.f32 %v2010_v51, %v294_v62  ;;  %2279 = vtanh.f32 %v320_v63  ;;  %v310_v18 = vrot.slane %v278_v6, %v2489_v7  ;;  %v324_v20 = vadd.f32 %v2014_v4, %v302_v11 }
 0x10a   :  { %2281 = vtanh.f32 %v321_v2  ;;  %v325_v21 = vadd.f32 %v2017_v13, %v306_v14  ;;  %v420_v44 = vrot.slane %v2498_v9, %v2577_v42  ;;  %v413_v45 = vrot.slane %v2498_v9, %v2580_v43  ;;  %v388_v47 = vpop.permute.xlu1 %387  ;;  %v402_v50 = vpop.permute.xlu0 %401 }
 0x10b   :  { %2283 = vtanh.f32 %v322_v12  ;;  %v326_v22 = vadd.f32 %v2018_v17, %v310_v18  ;;  %v473_v13 = vand.u32 127, %v234_v1 }
 0x10c   :  { %2285 = vtanh.f32 %v323_v16 }
 0x10d   :  { %2287 = vtanh.f32 %v324_v20  ;;  %v2603_v16 = vsub.s32 %v473_v13, %v2476_v3 }
 0x10e   :  { %2289 = vtanh.f32 %v325_v21  ;;  %v395_v49 = vpop.permute.xlu1 %394 }
 0x10f   :  { %2291 = vtanh.f32 %v326_v22 }
 0x112   :  { %v409_v51 = vpop.permute.xlu1 %408 }
 0x115   :  { %v2278_v24 = vpop.eup %2277 }
 0x116   :  { %v342_v26 = vmul.f32 %v2278_v24, %v1904_v23  ;;  %v2280_v27 = vpop.eup %2279 }
 0x117   :  { %v2282_v28 = vpop.eup %2281  ;;  %v343_v31 = vmul.f32 %v2280_v27, %v1904_v23 }
 0x118   :  { %350 = vadd.xlane.f32.xlu0 %v342_v26  ;;  %v344_v29 = vmul.f32 %v2282_v28, %v1904_v23  ;;  %v2284_v30 = vpop.eup %2283 }
 0x119   :  { %v2286_v32 = vpop.eup %2285  ;;  %v345_v33 = vmul.f32 %v2284_v30, %v1904_v23 }
 0x11a   :  { %354 = vadd.xlane.f32.xlu1 %v344_v29  ;;  %v2288_v34 = vpop.eup %2287  ;;  %v346_v35 = vmul.f32 %v2286_v32, %v1904_v23 }
 0x11b   :  { %v2290_v36 = vpop.eup %2289  ;;  %v347_v37 = vmul.f32 %v2288_v34, %v1904_v23 }
 0x11c   :  { %352 = vadd.xlane.f32.xlu0 %v343_v31  ;;  %v2292_v38 = vpop.eup %2291  ;;  %v348_v39 = vmul.f32 %v2290_v36, %v1904_v23 }
 0x11d   :  { %v349_v41 = vmul.f32 %v2292_v38, %v1904_v23 }
 0x11e   :  { %356 = vadd.xlane.f32.xlu1 %v345_v33 }
 0x120   :  { %358 = vadd.xlane.f32.xlu0 %v346_v35 }
 0x122   :  { %360 = vadd.xlane.f32.xlu1 %v347_v37 }
 0x124   :  { %362 = vadd.xlane.f32.xlu0 %v348_v39 }
 0x126   :  { %364 = vadd.xlane.f32.xlu1 %v349_v41 }
 0x137   :  { %422 = vbcast.lane.b32.xlu1 %v420_v44, 256 }
 0x13a   :  { %415 = vbcast.lane.b32.xlu0 %v413_v45, 256 }
 0x1a1   :  { %v351_v52 = vpop.xlane.xlu0 %350 }
 0x1a2   :  { %v2586_v53 = vadd.f32 %v374_v48, %v351_v52 }
 0x1a3   :  { %v355_v54 = vpop.xlane.xlu1 %354 }
 0x1a4   :  { %449 = vperm.xlu0 %2139, %v2586_v53   ;;  %v434_v59 = vadd.f32 %v388_v47, %v355_v54 }
 0x1a5   :  { %v353_v55 = vpop.xlane.xlu0 %352 }
 0x1a6   :  { %v433_v56 = vadd.f32 %v381_v46, %v353_v55 }
 0x1a7   :  { %v357_v57 = vpop.xlane.xlu1 %356 }
 0x1a8   :  { %452 = vperm.xlu1 %2140, %v433_v56   ;;  %v2589_v58 = vadd.f32 %v395_v49, %v357_v57 }
 0x1a9   :  { %v359_v9 = vpop.xlane.xlu0 %358 }
 0x1aa   :  { %458 = vperm.xlu0 %2139, %v2589_v58   ;;  %v436_v63 = vadd.f32 %v402_v50, %v359_v9 }
 0x1ab   :  { %v361_v60 = vpop.xlane.xlu1 %360 }
 0x1ac   :  { %455 = vperm.xlu1 %2140, %v434_v59   ;;  %v2592_v61 = vadd.f32 %v409_v51, %v361_v60 }
 0x1ad   :  { %v363_v62 = vpop.xlane.xlu0 %362 }
 0x1ae   :  { %464 = vperm.xlu0 %2139, %v2592_v61  }
 0x1af   :  { %v365_v2 = vpop.xlane.xlu1 %364 }
 0x1b0   :  { %461 = vperm.xlu1 %2140, %v436_v63  }
 0x1b1   :  { %v416_v4 = vpop.permute.xlu0 %415 }
 0x1b2   :  { %v2595_v6 = vadd.f32 %v416_v4, %v363_v62 }
 0x1b3   :  { %v423_v11 = vpop.permute.xlu1 %422 }
 0x1b4   :  { %467 = vperm.xlu1 %2140, %v2595_v6   ;;  %v2598_v12 = vadd.f32 %v423_v11, %v365_v2 }
 0x1b6   :  { %470 = vperm.xlu0 %2139, %v2598_v12  }
 0x21f   :  { %v450_v14 = vpop.permute.xlu0 %449 }
 0x220   :  { %v477_v21 = vrot.slane %v450_v14, %v2603_v16 }
 0x223   :  { %v453_v17 = vpop.permute.xlu1 %452 }
 0x224   :  { %v481_v18 = vrot.slane %v453_v17, %v2603_v16 }
 0x225   :  { %v459_v20 = vpop.permute.xlu0 %458 }
 0x226   :  { %v507_v24 = vsel %vm506_vm1, %v481_v18, %v477_v21  ;;  %v489_v1 = vrot.slane %v459_v20, %v2603_v16 }
 0x227   :  { %v456_v22 = vpop.permute.xlu1 %455 }
 0x228   :  { %v485_v23 = vrot.slane %v456_v22, %v2603_v16 }
 0x229   :  { %v465_v27 = vpop.permute.xlu0 %464 }
 0x22a   :  { %v509_v26 = vsel %vm508_vm2, %v485_v23, %v507_v24  ;;  %v497_v31 = vrot.slane %v465_v27, %v2603_v16 }
 0x22b   :  { %v462_v3 = vpop.permute.xlu1 %461  ;;  %v511_v29 = vsel %vm510_vm3, %v489_v1, %v509_v26 }
 0x22c   :  { %v493_v28 = vrot.slane %v462_v3, %v2603_v16 }
 0x22e   :  { %v513_v30 = vsel %vm512_vm4, %v493_v28, %v511_v29 }
 0x22f   :  { %v468_v32 = vpop.permute.xlu1 %467  ;;  %v515_v34 = vsel %vm514_vm5, %v497_v31, %v513_v30 }
 0x230   :  { %v501_v33 = vrot.slane %v468_v32, %v2603_v16 }
 0x231   :  { %v471_v35 = vpop.permute.xlu0 %470 }
 0x232   :  { %v517_v36 = vsel %vm516_vm6, %v501_v33, %v515_v34  ;;  %v505_v37 = vrot.slane %v471_v35, %v2603_v16 }
 0x234   :  { %v519_v38 = vsel %vm518_vm7, %v505_v37, %v517_v36 }
 0x235   :  { %v522_v39 = vsel %vm521_vm8, %v519_v38, -inf }
 0x236   :  { %523 = vmax.xlane.f32.xlu1 %v522_v39 }
 0x2bf   :  { %v524_v41 = vpop.xlane.xlu1 %523 }
 0x2c0   :  { %v529_v44 = vrot.slane %v524_v41, %v2489_v7  ;;  %v533_v45 = vrot.slane %v524_v41, %v2483_v5  ;;  %v537_v46 = vrot.slane %v524_v41, %v2493_v8  ;;  %v541_v50 = vrot.slane %v524_v41, %v2514_v15 }
 0x2c1   :  { %v545_v54 = vrot.slane %v524_v41, %v2501_v10  ;;  %v549_v9 = vrot.slane %v524_v41, %v2525_v19  ;;  %v557_v4 = vrot.slane %v524_v41, %v2577_v42 }
 0x2c2   :  { %v566_v47 = vsub.f32 %v2586_v53, %v529_v44  ;;  %v567_v48 = vsub.f32 %v433_v56, %v533_v45  ;;  %v568_v51 = vsub.f32 %v434_v59, %v537_v46  ;;  %v569_v55 = vsub.f32 %v2589_v58, %v541_v50  ;;  %v2152_v50 = vld [vmem:[%s2950_s9 + $0x94] ss:$12 sps:$4 sm:$0xff]  }
 0x2c3   :  { %v570_v60 = vsub.f32 %v436_v63, %v545_v54  ;;  %v553_v53 = vrot.slane %v524_v41, %v2580_v43  ;;  %v571_v56 = vsub.f32 %v2592_v61, %v549_v9  ;;  %v573_v63 = vsub.f32 %v2598_v12, %v557_v4  ;;  %v2158_v54 = vld [vmem:[%s2950_s9 + $0x64] ss:$12 sps:$4 sm:$0xff]   ;;  %v2163_v9 = vld [vmem:[%s2950_s9 + $0x48] ss:$12 sps:$4 sm:$0xff]  }
 0x2c4   :  { %v574_v49 = vmul.f32 1.442695, %v566_v47  ;;  %v576_v52 = vmul.f32 1.442695, %v567_v48  ;;  %v578_v57 = vmul.f32 1.442695, %v568_v51 }
 0x2c5   :  { %v580_v62 = vmul.f32 1.442695, %v569_v55  ;;  %v582_v2 = vmul.f32 1.442695, %v570_v60  ;;  %v572_v58 = vsub.f32 %v2595_v6, %v553_v53  ;;  %v584_v11 = vmul.f32 1.442695, %v571_v56 }
 0x2c6   :  { %2293 = vpow2.f32 %v574_v49  ;;  %v588_v17 = vmul.f32 1.442695, %v573_v63  ;;  %v2149_v48 = vld [vmem:[%s2950_s9 + $0xac] ss:$12 sps:$4 sm:$0xff]   ;;  %v2151_v49 = vld [vmem:[%s2950_s9 + $0xa8] ss:$12 sps:$4 sm:$0xff]  }
 0x2c7   :  { %2295 = vpow2.f32 %v576_v52  ;;  %v586_v61 = vmul.f32 1.442695, %v572_v58  ;;  %1293 = vmatprep.subr.bf16.mxu1 %v2149_v48  ;;  %v2155_v51 = vld [vmem:[%s2950_s9 + $0x7c] ss:$12 sps:$4 sm:$0xff]   ;;  %v2157_v52 = vld [vmem:[%s2950_s9 + $0x78] ss:$12 sps:$4 sm:$0xff]  }
 0x2c8   :  { %2297 = vpow2.f32 %v578_v57  ;;  %1294 = vmatpush1.bf16.msra.mxu1 %v2151_v49  ;;  %v2160_v55 = vld [vmem:[%s2950_s9 + $0x60] ss:$12 sps:$4 sm:$0xff]   ;;  %v2195_v48 = vld [vmem:[%s2950_s9 + $0x110] ss:$12 sps:$4 sm:$0xff]   ;;  %v2196_v49 = vld [vmem:[%s2950_s9 + $0x108] ss:$12 sps:$4 sm:$0xff]  }
 0x2c9   :  { %2299 = vpow2.f32 %v580_v62  ;;  %1295 = vmatprep.subr.bf16.mxu1 %v2152_v50  ;;  %v2161_v57 = vld [vmem:[%s2950_s9 + $0x4c] ss:$12 sps:$4 sm:$0xff]   ;;  %v2197_v50 = vld [vmem:[%s2950_s9 + $0x50] ss:$12 sps:$4 sm:$0xff]  }
 0x2ca   :  { %2301 = vpow2.f32 %v582_v2 }
 0x2cb   :  { %2303 = vpow2.f32 %v584_v11 }
 0x2cc   :  { %2305 = vpow2.f32 %v586_v61 }
 0x2cd   :  { %2307 = vpow2.f32 %v588_v17 }
 0x2d3   :  { %v2631_v59 = vpop.eup %2293 }
 0x2d4   :  { %599 = vperm.xlu0 %2139, %v2631_v59   ;;  %v2636_v13 = vpop.eup %2295 }
 0x2d5   :  { %v2640_v14 = vpop.eup %2297 }
 0x2d6   :  { %v2643_v18 = vpop.eup %2299 }
 0x2d7   :  { %v2646_v6 = vpop.eup %2301 }
 0x2d8   :  { %602 = vperm.xlu0 %2139, %v2636_v13   ;;  %v2649_v20 = vpop.eup %2303 }
 0x2d9   :  { %v2652_v12 = vpop.eup %2305 }
 0x2da   :  { %v2655_v21 = vpop.eup %2307 }
 0x2dc   :  { %605 = vperm.xlu0 %2139, %v2640_v14  }
 0x2e0   :  { %608 = vperm.xlu0 %2139, %v2643_v18  }
 0x2e4   :  { %611 = vperm.xlu0 %2139, %v2646_v6  }
 0x2e8   :  { %614 = vperm.xlu0 %2139, %v2649_v20  }
 0x2ec   :  { %617 = vperm.xlu0 %2139, %v2652_v12  }
 0x2f0   :  { %620 = vperm.xlu0 %2139, %v2655_v21  }
 0x34f   :  { %v600_v22 = vpop.permute.xlu0 %599 }
 0x350   :  { %v625_v29 = vrot.slane %v600_v22, %v2603_v16 }
 0x353   :  { %v603_v23 = vpop.permute.xlu0 %602 }
 0x354   :  { %v629_v27 = vrot.slane %v603_v23, %v2603_v16  ;;  %v2164_v23 = vld [vmem:[%s2950_s9 + $0x34] ss:$12 sps:$4 sm:$0xff]  }
 0x356   :  { %v654_v33 = vsel %vm506_vm1, %v629_v27, %v625_v29  ;;  %v2173_v27 = vld [vmem:[%s2950_s9 + $0x16c] ss:$12 sps:$4 sm:$0xff]  }
 0x357   :  { %v606_v24 = vpop.permute.xlu0 %605 }
 0x358   :  { %v633_v28 = vrot.slane %v606_v24, %v2603_v16 }
 0x35a   :  { %v655_v35 = vsel %vm508_vm2, %v633_v28, %v654_v33  ;;  %v2175_v28 = vld [vmem:[%s2950_s9 + $0x170] ss:$12 sps:$4 sm:$0xff]  }
 0x35b   :  { %v609_v26 = vpop.permute.xlu0 %608  ;;  %2031 = vmatprep.subr.bf16.mxu0 %v2175_v28 }
 0x35c   :  { %v637_v30 = vrot.slane %v609_v26, %v2603_v16  ;;  %v2170_v26 = vld [vmem:[%s2950_s9 + $0x4] ss:$12 sps:$4 sm:$0xff]  }
 0x35e   :  { %v656_v37 = vsel %vm510_vm3, %v637_v30, %v655_v35  ;;  %v2177_v30 = vld [vmem:[%s2950_s9 + $0xb0] ss:$12 sps:$4 sm:$0xff]   ;;  %v2182_v35 = vld [vmem:[%s2950_s9 + $0x98] ss:$12 sps:$4 sm:$0xff]  }
 0x35f   :  { %v612_v1 = vpop.permute.xlu0 %611  ;;  %2032 = vmatpush3.bf16.msra.mxu0 %v2177_v30 }
 0x360   :  { %v641_v31 = vrot.slane %v612_v1, %v2603_v16 }
 0x362   :  { %v657_v38 = vsel %vm512_vm4, %v641_v31, %v656_v37  ;;  %v2183_v37 = vld [vmem:[%s2950_s9 + $0x13c] ss:$12 sps:$4 sm:$0xff]  }
 0x363   :  { %v615_v3 = vpop.permute.xlu0 %614 }
 0x364   :  { %v645_v34 = vrot.slane %v615_v3, %v2603_v16  ;;  %v2172_v3 = vld [vmem:[%s2950_s9] ss:$12 sps:$4 sm:$0xff]  }
 0x366   :  { %v658_v41 = vsel %vm514_vm5, %v645_v34, %v657_v38  ;;  %v2181_v34 = vld [vmem:[%s2950_s9 + $0x150] ss:$12 sps:$4 sm:$0xff]  }
 0x367   :  { %v618_v32 = vpop.permute.xlu0 %617 }
 0x368   :  { %v649_v36 = vrot.slane %v618_v32, %v2603_v16  ;;  %v2178_v32 = vld [vmem:[%s2950_s9 + $0x154] ss:$12 sps:$4 sm:$0xff]  }
 0x36a   :  { %v659_v45 = vsel %vm516_vm6, %v649_v36, %v658_v41  ;;  %v2187_v41 = vld [vmem:[%s2950_s9 + $0x80] ss:$12 sps:$4 sm:$0xff]  }
 0x36b   :  { %v621_v39 = vpop.permute.xlu0 %620 }
 0x36c   :  { %v653_v44 = vrot.slane %v621_v39, %v2603_v16  ;;  %v2154_v16 = vld [vmem:[%s2950_s9 + $0x90] ss:$12 sps:$4 sm:$0xff]   ;;  %v2186_v39 = vld [vmem:[%s2950_s9 + $0x138] ss:$12 sps:$4 sm:$0xff]  }
 0x36d   :  { %1296 = vmatpush1.bf16.msra.mxu1 %v2154_v16  ;;  %v2198_v16 = vld [vmem:[%s2950_s9 + $0xf4] ss:$12 sps:$4 sm:$0xff]  }
 0x36e   :  { %v660_v46 = vsel %vm518_vm7, %v653_v44, %v659_v45  ;;  %1297 = vmatprep.subr.bf16.mxu1 %v2155_v51  ;;  %v2188_v44 = vld [vmem:[%s2950_s9 + $0x124] ss:$12 sps:$4 sm:$0xff]   ;;  %v2191_v45 = vld [vmem:[%s2950_s9 + $0x120] ss:$12 sps:$4 sm:$0xff]  }
 0x36f   :  { %v662_v47 = vsel %vm521_vm8, %v660_v46, 0.0  ;;  %v2192_v46 = vld [vmem:[%s2950_s9 + $0x68] ss:$12 sps:$4 sm:$0xff]   ;;  %v2200_v51 = vld [vmem:[%s2950_s9 + $0xf8] ss:$12 sps:$4 sm:$0xff]  }
 0x370   :  { %663 = vadd.xlane.f32.xlu0 %v662_v47  ;;  %v2193_v47 = vld [vmem:[%s2950_s9 + $0x10c] ss:$12 sps:$4 sm:$0xff]  }
 0x371   :  { %1298 = vmatpush1.bf16.msra.mxu1 %v2157_v52  ;;  %v2201_v52 = vld [vmem:[%s2950_s9 + $0xf0] ss:$12 sps:$4 sm:$0xff]  }
 0x372   :  { %1299 = vmatprep.subr.bf16.mxu1 %v2158_v54  ;;  %v2202_v54 = vld [vmem:[%s2950_s9 + $0x38] ss:$12 sps:$4 sm:$0xff]  }
 0x375   :  { %1300 = vmatpush1.bf16.msra.mxu1 %v2160_v55  ;;  %v2203_v55 = vld [vmem:[%s2950_s9 + $0xdc] ss:$12 sps:$4 sm:$0xff]  }
 0x376   :  { %1301 = vmatprep.subr.bf16.mxu1 %v2161_v57  ;;  %v2205_v57 = vld [vmem:[%s2950_s9 + $0xe0] ss:$12 sps:$4 sm:$0xff]  }
 0x379   :  { %1302 = vmatpush1.bf16.msra.mxu1 %v2163_v9  ;;  %v2206_v9 = vld [vmem:[%s2950_s9 + $0xd8] ss:$12 sps:$4 sm:$0xff]  }
 0x37a   :  { %1303 = vmatprep.subr.bf16.mxu1 %v2164_v23 }
 0x3f9   :  { %v664_v60 = vpop.xlane.xlu0 %663 }
 0x3fa   :  { %v685_v62 = vrot.slane %v664_v60, %v2501_v10  ;;  %v669_v53 = vrot.slane %v664_v60, %v2489_v7  ;;  %v673_v56 = vrot.slane %v664_v60, %v2483_v5  ;;  %v677_v2 = vrot.slane %v664_v60, %v2493_v8 }
 0x3fb   :  { %v681_v4 = vrot.slane %v664_v60, %v2514_v15  ;;  %v689_v58 = vrot.slane %v664_v60, %v2525_v19  ;;  %v693_v17 = vrot.slane %v664_v60, %v2580_v43  ;;  %v697_v19 = vrot.slane %v664_v60, %v2577_v42  ;;  %v2167_v43 = vld [vmem:[%s2950_s9 + $0x1c] ss:$12 sps:$4 sm:$0xff]   ;;  %v2207_v60 = vld [vmem:[%s2950_s9 + $0x20] ss:$12 sps:$4 sm:$0xff]  }
 0x3fc   :  { %2309 = vrcp.f32 %v685_v62  ;;  %v2208_v62 = vld [vmem:[%s2950_s9 + $0xc4] ss:$12 sps:$4 sm:$0xff]  }
 0x3fd   :  { %2311 = vrcp.f32 %v669_v53  ;;  %v2210_v53 = vld [vmem:[%s2950_s9 + $0xc8] ss:$12 sps:$4 sm:$0xff]  }
 0x3fe   :  { %2313 = vrcp.f32 %v673_v56  ;;  %v2211_v56 = vld [vmem:[%s2950_s9 + $0xc0] ss:$12 sps:$4 sm:$0xff]  }
 0x3ff   :  { %2315 = vrcp.f32 %v677_v2  ;;  %v2212_v2 = vld [vmem:[%s2950_s9 + $0x8] ss:$12 sps:$4 sm:$0xff]  }
 0x400   :  { %2317 = vrcp.f32 %v681_v4  ;;  %v2215_v4 = vld [vmem:[#allocation2 + $0xac] ss:$12 sps:$4 sm:$0xff]  }
 0x401   :  { %2319 = vrcp.f32 %v689_v58  ;;  %v81_v58 = vld [vmem:[%s2943_s2 + $0x20] sm:$0xff] }
 0x402   :  { %2321 = vrcp.f32 %v693_v17 }
 0x403   :  { %2323 = vrcp.f32 %v697_v19 }
 0x409   :  { %v2310_v11 = vpop.eup %2309 }
 0x40a   :  { %v2312_v63 = vpop.eup %2311  ;;  %v715_v61 = vmul.f32 %v2310_v11, %v2646_v6  ;;  %v2166_v6 = vld [vmem:[%s2950_s9 + $0x30] ss:$12 sps:$4 sm:$0xff]   ;;  %v77_v11 = vld [vmem:[%s2943_s2] sm:$0xff] }
 0x40b   :  { %v707_v10 = vmul.f32 %v2312_v63, %v2631_v59  ;;  %v2314_v22 = vpop.eup %2313  ;;  %1304 = vmatpush1.bf16.msra.mxu1 %v2166_v6  ;;  %v93_v63 = vunpack.c.l.bf16 %v81_v58  ;;  %v86_v17 = vunpack.c.h.bf16 %v77_v11 }
 0x40c   :  { %744 = vperm.xlu0 %2139, %v715_v61   ;;  %v709_v15 = vmul.f32 %v2314_v22, %v2636_v13  ;;  %v2316_v59 = vpop.eup %2315  ;;  %v2169_v13 = vld [vmem:[%s2950_s9 + $0x18] ss:$12 sps:$4 sm:$0xff]   ;;  %1305 = vmatprep.subr.bf16.mxu1 %v2167_v43  ;;  %v94_v61 = vunpack.c.h.bf16 %v81_v58  ;;  %v78_v22 = vld [vmem:[%s2943_s2 + $0x8] sm:$0xff] }
 0x40d   :  { %724 = vperm.xlu1 %2140, %v707_v10   ;;  %v711_v24 = vmul.f32 %v2316_v59, %v2640_v14  ;;  %v2318_v42 = vpop.eup %2317  ;;  %v85_v10 = vunpack.c.l.bf16 %v77_v11 }
 0x40e   :  { %v713_v1 = vmul.f32 %v2318_v42, %v2643_v18  ;;  %v2320_v14 = vpop.eup %2319  ;;  %v2176_v18 = vld [vmem:[%s2950_s9 + $0x168] ss:$12 sps:$4 sm:$0xff]  }
 0x40f   :  { %1306 = vmatpush1.bf16.msra.mxu1 %v2169_v13  ;;  %v717_v29 = vmul.f32 %v2320_v14, %v2649_v20  ;;  %v2322_v31 = vpop.eup %2321  ;;  %v2180_v20 = vld [vmem:[%s2950_s9 + $0x158] ss:$12 sps:$4 sm:$0xff]   ;;  %v88_v13 = vunpack.c.h.bf16 %v78_v22  ;;  %v79_v14 = vld [vmem:[%s2943_s2 + $0x10] sm:$0xff] }
 0x410   :  { %1307 = vmatprep.subr.bf16.mxu1 %v2170_v26  ;;  %v719_v33 = vmul.f32 %v2322_v31, %v2652_v12  ;;  %v2324_v36 = vpop.eup %2323  ;;  %2033 = vmatprep.subr.bf16.mxu0 %v2180_v20  ;;  %v2185_v12 = vld [vmem:[%s2950_s9 + $0x140] ss:$12 sps:$4 sm:$0xff]  }
 0x411   :  { %729 = vperm.xlu1 %2140, %v709_v15   ;;  %2034 = vmatpush3.bf16.msra.mxu0 %v2182_v35  ;;  %v721_v38 = vmul.f32 %v2324_v36, %v2655_v21  ;;  %v2190_v21 = vld [vmem:[%s2950_s9 + $0x128] ss:$12 sps:$4 sm:$0xff]   ;;  %v90_v35 = vunpack.c.h.bf16 %v79_v14 }
 0x412   :  { %2035 = vmatprep.subr.bf16.mxu0 %v2185_v12 }
 0x413   :  { %1308 = vmatpush1.bf16.msra.mxu1 %v2172_v3 }
 0x414   :  { %1309 = vmatprep.subr.bf16.mxu1 %v2173_v27 }
 0x415   :  { %734 = vperm.xlu1 %2140, %v711_v24   ;;  %2036 = vmatpush3.bf16.msra.mxu0 %v2187_v41  ;;  %v87_v24 = vunpack.c.l.bf16 %v78_v22 }
 0x416   :  { %2037 = vmatprep.subr.bf16.mxu0 %v2190_v21 }
 0x417   :  { %1310 = vmatpush2.bf16.msra.mxu1 %v2176_v18 }
 0x418   :  { %1311 = vmatprep.subr.bf16.mxu1 %v2178_v32 }
 0x419   :  { %739 = vperm.xlu1 %2140, %v713_v1   ;;  %2038 = vmatpush3.bf16.msra.mxu0 %v2192_v46 }
 0x41a   :  { %2039 = vmatprep.subr.bf16.mxu0 %v2195_v48 }
 0x41b   :  { %1312 = vmatpush2.bf16.msra.mxu1 %v2181_v34  ;;  %v89_v34 = vunpack.c.l.bf16 %v79_v14 }
 0x41c   :  { %1313 = vmatprep.subr.bf16.mxu1 %v2183_v37 }
 0x41d   :  { %749 = vperm.xlu1 %2140, %v717_v29   ;;  %2040 = vmatpush3.bf16.msra.mxu0 %v2197_v50  ;;  %v80_v50 = vld [vmem:[%s2943_s2 + $0x18] sm:$0xff] }
 0x41e   :  { %2041 = vmatprep.subr.bf16.mxu0 %v2200_v51 }
 0x41f   :  { %1314 = vmatpush2.bf16.msra.mxu1 %v2186_v39 }
 0x420   :  { %1315 = vmatprep.subr.bf16.mxu1 %v2188_v44 }
 0x421   :  { %754 = vperm.xlu1 %2140, %v719_v33   ;;  %2042 = vmatpush3.bf16.msra.mxu0 %v2202_v54  ;;  %v82_v54 = vld [vmem:[%s2943_s2 + $0x28] sm:$0xff] }
 0x422   :  { %2043 = vmatprep.subr.bf16.mxu0 %v2205_v57 }
 0x423   :  { %1316 = vmatpush2.bf16.msra.mxu1 %v2191_v45 }
 0x424   :  { %1317 = vmatprep.subr.bf16.mxu1 %v2193_v47 }
 0x425   :  { %759 = vperm.xlu1 %2140, %v721_v38   ;;  %2044 = vmatpush3.bf16.msra.mxu0 %v2207_v60 }
 0x426   :  { %2045 = vmatprep.subr.bf16.mxu0 %v2210_v53 }
 0x427   :  { %1318 = vmatpush2.bf16.msra.mxu1 %v2196_v49 }
 0x428   :  { %1319 = vmatprep.subr.bf16.mxu1 %v2198_v16 }
 0x429   :  { %2046 = vmatpush3.bf16.msra.mxu0 %v2212_v2  ;;  %v91_v2 = vunpack.c.l.bf16 %v80_v50 }
 0x42a   :  { %1502 = vmatprep.subr.bf16.mxu0 %v2215_v4  ;;  %v92_v4 = vunpack.c.h.bf16 %v80_v50 }
 0x42b   :  { %1320 = vmatpush2.bf16.msra.mxu1 %v2201_v52 }
 0x42c   :  { %1321 = vmatprep.subr.bf16.mxu1 %v2203_v55 }
 0x42f   :  { %1322 = vmatpush2.bf16.msra.mxu1 %v2206_v9 }
 0x430   :  { %1323 = vmatprep.subr.bf16.mxu1 %v2208_v62  ;;  %v83_v62 = vld [vmem:[%s2943_s2 + $0x30] sm:$0xff] }
 0x433   :  { %1324 = vmatpush2.bf16.msra.mxu1 %v2211_v56 }
 0x434   :  { %2091 = vmatprep.subr.bf16.mxu1 %v2384_v0 }
 0x487   :  { %v745_v23 = vpop.permute.xlu0 %744 }
 0x488   :  { %v770_v15 = vmul.f32 %v745_v23, %v93_v63  ;;  %v771_v19 = vmul.f32 %v745_v23, %v94_v61  ;;  %v725_v6 = vpop.permute.xlu1 %724  ;;  %v95_v61 = vunpack.c.l.bf16 %v82_v54  ;;  %v96_v23 = vunpack.c.h.bf16 %v82_v54 }
 0x489   :  { %v762_v59 = vmul.f32 %v725_v6, %v85_v10  ;;  %v763_v43 = vmul.f32 %v725_v6, %v86_v17  ;;  %v2859_v10 = vld [vmem:[%s2943_s2 + $0x38] sm:$0xff] }
 0x48a   :  { %v826_v42 = vrot.slane %v770_v15, 4  ;;  %v832_v26 = vrot.slane %v771_v19, 4 }
 0x48b   :  { %v778_v1 = vrot.slane %v762_v59, 4  ;;  %v784_v3 = vrot.slane %v763_v43, 4 }
 0x48c   :  { %v827_v27 = vadd.f32 %v826_v42, %v770_v15  ;;  %v833_v28 = vadd.f32 %v832_v26, %v771_v19  ;;  %v730_v29 = vpop.permute.xlu1 %729  ;;  %v97_v15 = vunpack.c.l.bf16 %v83_v62  ;;  %v99_v26 = vunpack.c.l.bf16 %v2859_v10 }
 0x48d   :  { %v779_v18 = vadd.f32 %v778_v1, %v762_v59  ;;  %v785_v30 = vadd.f32 %v784_v3, %v763_v43  ;;  %v764_v31 = vmul.f32 %v730_v29, %v87_v24  ;;  %v765_v32 = vmul.f32 %v730_v29, %v88_v13 }
 0x48e   :  { %v828_v20 = vrot.slane %v827_v27, 2  ;;  %v834_v33 = vrot.slane %v833_v28, 2  ;;  %v98_v24 = vunpack.c.h.bf16 %v83_v62  ;;  %v100_v1 = vunpack.c.h.bf16 %v2859_v10 }
 0x48f   :  { %v780_v36 = vrot.slane %v779_v18, 2  ;;  %v786_v37 = vrot.slane %v785_v30, 2  ;;  %v790_v12 = vrot.slane %v764_v31, 4  ;;  %v796_v38 = vrot.slane %v765_v32, 4 }
 0x490   :  { %v829_v39 = vadd.f32 %v828_v20, %v827_v27  ;;  %v835_v41 = vadd.f32 %v834_v33, %v833_v28  ;;  %v735_v44 = vpop.permute.xlu1 %734 }
 0x491   :  { %v781_v21 = vadd.f32 %v780_v36, %v779_v18  ;;  %v787_v45 = vadd.f32 %v786_v37, %v785_v30  ;;  %v791_v46 = vadd.f32 %v790_v12, %v764_v31  ;;  %v797_v47 = vadd.f32 %v796_v38, %v765_v32 }
 0x492   :  { %v766_v48 = vmul.f32 %v735_v44, %v89_v34  ;;  %v767_v49 = vmul.f32 %v735_v44, %v90_v35  ;;  %v830_v53 = vrot.slane %v829_v39, 1  ;;  %v836_v56 = vrot.slane %v835_v41, 1 }
 0x493   :  { %v782_v16 = vrot.slane %v781_v21, 1  ;;  %v788_v51 = vrot.slane %v787_v45, 1  ;;  %v792_v52 = vrot.slane %v791_v46, 2  ;;  %v798_v55 = vrot.slane %v797_v47, 2 }
 0x494   :  { %v802_v57 = vrot.slane %v766_v48, 4  ;;  %v808_v9 = vrot.slane %v767_v49, 4  ;;  %v740_v60 = vpop.permute.xlu1 %739  ;;  %v2861_v13 = vadd.f32 %v830_v53, %v829_v39  ;;  %v2863_v42 = vadd.f32 %v836_v56, %v835_v41 }
 0x495   :  { %v793_v58 = vadd.f32 %v792_v52, %v791_v46  ;;  %v783_v17 = vadd.f32 %v782_v16, %v781_v21  ;;  %v789_v22 = vadd.f32 %v788_v51, %v787_v45  ;;  %v799_v19 = vadd.f32 %v798_v55, %v797_v47 }
 0x496   :  { %v803_v11 = vadd.f32 %v802_v57, %v766_v48  ;;  %v809_v63 = vadd.f32 %v808_v9, %v767_v49  ;;  %v768_v27 = vmul.f32 %v740_v60, %v91_v2  ;;  %v769_v28 = vmul.f32 %v740_v60, %v92_v4 }
 0x497   :  { %v794_v3 = vrot.slane %v793_v58, 1  ;;  %v907_v29 = vpack.c.bf16 %v783_v17, %v783_v17  ;;  %v908_v18 = vpack.c.bf16 %v789_v22, %v789_v22  ;;  %v800_v32 = vrot.slane %v799_v19, 1 }
 0x498   :  { %v804_v6 = vrot.slane %v803_v11, 2  ;;  %v810_v59 = vrot.slane %v809_v63, 2  ;;  %v750_v43 = vpop.permute.xlu1 %749  ;;  %v814_v33 = vrot.slane %v768_v27, 4  ;;  %v820_v34 = vrot.slane %v769_v28, 4 }
 0x499   :  { %v772_v30 = vmul.f32 %v750_v43, %v95_v61  ;;  %v773_v31 = vmul.f32 %v750_v43, %v96_v23  ;;  %v915_v36 = vpack.c.bf16 %v2861_v13, %v2861_v13  ;;  %v916_v37 = vpack.c.bf16 %v2863_v42, %v2863_v42 }
 0x49a   :  { %v805_v14 = vadd.f32 %v804_v6, %v803_v11  ;;  %v811_v20 = vadd.f32 %v810_v59, %v809_v63  ;;  %v795_v39 = vadd.f32 %v794_v3, %v793_v58  ;;  %v815_v44 = vadd.f32 %v814_v33, %v768_v27 }
 0x49b   :  { %v838_v12 = vrot.slane %v772_v30, 4  ;;  %v844_v38 = vrot.slane %v773_v31, 4  ;;  %v821_v21 = vadd.f32 %v820_v34, %v769_v28  ;;  %v1003_v45 = vunpack.c.l.b16 %v907_v29 }
 0x49c   :  { %v755_v35 = vpop.permute.xlu1 %754  ;;  %v806_v41 = vrot.slane %v805_v14, 1  ;;  %v2871_v46 = vunpack.c.l.b16 %v908_v18  ;;  %v801_v49 = vadd.f32 %v800_v32, %v799_v19  ;;  %v812_v50 = vrot.slane %v811_v20, 1 }
 0x49d   :  { %v839_v47 = vadd.f32 %v838_v12, %v772_v30  ;;  %v845_v48 = vadd.f32 %v844_v38, %v773_v31  ;;  %v816_v16 = vrot.slane %v815_v44, 2  ;;  %v822_v51 = vrot.slane %v821_v21, 2 }
 0x49e   :  { %v774_v55 = vmul.f32 %v755_v35, %v97_v15  ;;  %v775_v57 = vmul.f32 %v755_v35, %v98_v24  ;;  %v909_v60 = vpack.c.bf16 %v795_v39, %v795_v39  ;;  %v807_v62 = vadd.f32 %v806_v41, %v805_v14 }
 0x49f   :  { %v840_v52 = vrot.slane %v839_v47, 2  ;;  %v846_v54 = vrot.slane %v845_v48, 2  ;;  %v817_v53 = vadd.f32 %v816_v16, %v815_v44  ;;  %v823_v56 = vadd.f32 %v822_v51, %v821_v21 }
 0x4a0   :  { %v760_v9 = vpop.permute.xlu1 %759  ;;  %v850_v58 = vrot.slane %v774_v55, 4  ;;  %v856_v11 = vrot.slane %v775_v57, 4  ;;  %v813_v63 = vadd.f32 %v812_v50, %v811_v20  ;;  %v910_v3 = vpack.c.bf16 %v801_v49, %v801_v49 }
 0x4a1   :  { %v841_v2 = vadd.f32 %v840_v52, %v839_v47  ;;  %v847_v4 = vadd.f32 %v846_v54, %v845_v48  ;;  %v818_v61 = vrot.slane %v817_v53, 1  ;;  %v824_v10 = vrot.slane %v823_v56, 1 }
 0x4a2   :  { %v776_v17 = vmul.f32 %v760_v9, %v99_v26  ;;  %v851_v19 = vadd.f32 %v850_v58, %v774_v55  ;;  %v857_v6 = vadd.f32 %v856_v11, %v775_v57  ;;  %v777_v43 = vmul.f32 %v760_v9, %v100_v1 }
 0x4a3   :  { %v842_v22 = vrot.slane %v841_v2, 1  ;;  %v848_v23 = vrot.slane %v847_v4, 1  ;;  %v819_v59 = vadd.f32 %v818_v61, %v817_v53  ;;  %v825_v15 = vadd.f32 %v824_v10, %v823_v56 }
 0x4a4   :  { %v862_v24 = vrot.slane %v776_v17, 4  ;;  %v911_v14 = vpack.c.bf16 %v807_v62, %v807_v62  ;;  %v852_v27 = vrot.slane %v851_v19, 2  ;;  %v858_v28 = vrot.slane %v857_v6, 2 }
 0x4a5   :  { %v913_v29 = vpack.c.bf16 %v819_v59, %v819_v59  ;;  %v843_v18 = vadd.f32 %v842_v22, %v841_v2  ;;  %v868_v31 = vrot.slane %v777_v43, 4  ;;  %v1005_v32 = vunpack.c.l.b16 %v909_v60 }
 0x4a6   :  { %v863_v30 = vadd.f32 %v862_v24, %v776_v17  ;;  %v912_v20 = vpack.c.bf16 %v813_v63, %v813_v63  ;;  %v853_v33 = vadd.f32 %v852_v27, %v851_v19  ;;  %v859_v26 = vadd.f32 %v858_v28, %v857_v6 }
 0x4a7   :  { %v914_v34 = vpack.c.bf16 %v825_v15, %v825_v15  ;;  %v849_v35 = vadd.f32 %v848_v23, %v847_v4  ;;  %v869_v38 = vadd.f32 %v868_v31, %v777_v43  ;;  %v1006_v39 = vunpack.c.l.b16 %v910_v3  ;;  %v2217_v31 = vld [vmem:[#allocation2 + $0x90] ss:$12 sps:$4 sm:$0xff]  }
 0x4a8   :  { %v864_v12 = vrot.slane %v863_v30, 2  ;;  %v1007_v41 = vunpack.c.l.b16 %v911_v14  ;;  %v854_v1 = vrot.slane %v853_v33, 1  ;;  %v860_v44 = vrot.slane %v859_v26, 1 }
 0x4a9   :  { %v1009_v21 = vunpack.c.l.b16 %v913_v29  ;;  %v917_v47 = vpack.c.bf16 %v843_v18, %v843_v18  ;;  %v870_v49 = vrot.slane %v869_v38, 2  ;;  %v1019_v50 = vsel %vm506_vm1, %v1005_v32, %v1003_v45  ;;  %v2213_v29 = vld [vmem:[#allocation2 + $0xa8] ss:$12 sps:$4 sm:$0xff]   ;;  %v2216_v18 = vld [vmem:[#allocation2 + $0xb0] ss:$12 sps:$4 sm:$0xff]  }
 0x4aa   :  { %v865_v48 = vadd.f32 %v864_v12, %v863_v30  ;;  %v1008_v16 = vunpack.c.l.b16 %v912_v20  ;;  %v855_v51 = vadd.f32 %v854_v1, %v853_v33  ;;  %v861_v52 = vadd.f32 %v860_v44, %v859_v26  ;;  %v2219_v30 = vld [vmem:[#allocation2 + $0x94] ss:$12 sps:$4 sm:$0xff]   ;;  %v2220_v32 = vld [vmem:[#allocation2 + $0x98] ss:$12 sps:$4 sm:$0xff]   ;;  %v2223_v20 = vld [vmem:[#allocation2 + $0x7c] ss:$12 sps:$4 sm:$0xff]  }
 0x4ab   :  { %v1010_v54 = vunpack.c.l.b16 %v914_v34  ;;  %v918_v55 = vpack.c.bf16 %v849_v35, %v849_v35  ;;  %v871_v9 = vadd.f32 %v870_v49, %v869_v38  ;;  %v1026_v60 = vsel %vm506_vm1, %v1006_v39, %v2871_v46  ;;  %v2221_v33 = vld [vmem:[#allocation2 + $0x78] ss:$12 sps:$4 sm:$0xff]   ;;  %v2224_v26 = vld [vmem:[#allocation2 + $0x80] ss:$12 sps:$4 sm:$0xff]   ;;  %v2228_v12 = vld [vmem:[#allocation2 + $0x68] ss:$12 sps:$4 sm:$0xff]  }
 0x4ac   :  { %v866_v57 = vrot.slane %v865_v48, 1  ;;  %v1020_v62 = vsel %vm508_vm2, %v1007_v41, %v1019_v50  ;;  %v919_v53 = vpack.c.bf16 %v855_v51, %v855_v51  ;;  %v920_v56 = vpack.c.bf16 %v861_v52, %v861_v52  ;;  %v2227_v34 = vld [vmem:[#allocation2 + $0x64] ss:$12 sps:$4 sm:$0xff]   ;;  %v2225_v35 = vld [vmem:[#allocation2 + $0x60] ss:$12 sps:$4 sm:$0xff]  }
 0x4ad   :  { %v1013_v2 = vunpack.c.l.b16 %v917_v47  ;;  %v872_v58 = vrot.slane %v871_v9, 1  ;;  %v1021_v11 = vsel %vm510_vm3, %v1009_v21, %v1020_v62  ;;  %v1011_v45 = vunpack.c.l.b16 %v915_v36  ;;  %v2231_v38 = vld [vmem:[#allocation2 + $0x4c] ss:$12 sps:$4 sm:$0xff]   ;;  %v2229_v39 = vld [vmem:[#allocation2 + $0x48] ss:$12 sps:$4 sm:$0xff]   ;;  %v75_v52 = vld [vmem:[%s2941_s0] sm:$0xff] }
 0x4ae   :  { %v867_v4 = vadd.f32 %v866_v57, %v865_v48  ;;  %v1015_v63 = vunpack.c.l.b16 %v919_v53  ;;  %v1027_v61 = vsel %vm508_vm2, %v1008_v16, %v1026_v60  ;;  %v1014_v10 = vunpack.c.l.b16 %v918_v55  ;;  %v2232_v41 = vld [vmem:[#allocation2 + $0x50] ss:$12 sps:$4 sm:$0xff]   ;;  %v2235_v1 = vld [vmem:[#allocation2 + $0x34] ss:$12 sps:$4 sm:$0xff]   ;;  %v2236_v21 = vld [vmem:[#allocation2 + $0x38] ss:$12 sps:$4 sm:$0xff]  }
 0x4af   :  { %v873_v17 = vadd.f32 %v872_v58, %v871_v9  ;;  %v1028_v46 = vsel %vm510_vm3, %v1010_v54, %v1027_v61  ;;  %v1012_v23 = vunpack.c.l.b16 %v916_v37  ;;  %v1016_v19 = vunpack.c.l.b16 %v920_v56  ;;  %v2233_v44 = vld [vmem:[#allocation2 + $0x30] ss:$12 sps:$4 sm:$0xff]   ;;  %v2237_v48 = vld [vmem:[#allocation2 + $0x18] ss:$12 sps:$4 sm:$0xff]   ;;  %v2240_v49 = vld [vmem:[#allocation2 + $0x20] ss:$12 sps:$4 sm:$0xff]  }
 0x4b0   :  { %v921_v22 = vpack.c.bf16 %v867_v4, %v867_v4  ;;  %v1022_v6 = vsel %vm512_vm4, %v1011_v45, %v1021_v11  ;;  %v2239_v47 = vld [vmem:[#allocation2 + $0x1c] ss:$12 sps:$4 sm:$0xff]   ;;  %v2243_v50 = vld [vmem:[#allocation2 + $0x4] ss:$12 sps:$4 sm:$0xff]   ;;  %v2241_v16 = vld [vmem:[#allocation2] ss:$12 sps:$4 sm:$0xff]   ;;  %v874_v55 = vpack.c.bf16 %v75_v52, %v75_v52 }
 0x4b1   :  { %v922_v15 = vpack.c.bf16 %v873_v17, %v873_v17  ;;  %v1023_v13 = vsel %vm514_vm5, %v1013_v2, %v1022_v6  ;;  %v1029_v36 = vsel %vm512_vm4, %v1012_v23, %v1028_v46  ;;  %v2244_v51 = vld [vmem:[#allocation2 + $0x8] ss:$12 sps:$4 sm:$0xff]   ;;  %v2247_v54 = vld [vmem:[#allocation4 + $0xac] ss:$12 sps:$4 sm:$0xff]   ;;  %v2269_v9 = vld [vmem:[#allocation4 + $0xb0] ss:$12 sps:$4 sm:$0xff]  }
 0x4b2   :  { %v1017_v59 = vunpack.c.l.b16 %v921_v22  ;;  %v1024_v43 = vsel %vm516_vm6, %v1015_v63, %v1023_v13  ;;  %v1030_v3 = vsel %vm514_vm5, %v1014_v10, %v1029_v36  ;;  %v2245_v57 = vld [vmem:[#allocation4 + $0xa8] ss:$12 sps:$4 sm:$0xff]   ;;  %v2248_v62 = vld [vmem:[#allocation4 + $0x90] ss:$12 sps:$4 sm:$0xff]   ;;  %v2270_v53 = vld [vmem:[#allocation4 + $0x98] ss:$12 sps:$4 sm:$0xff]  }
 0x4b3   :  { %v1018_v24 = vunpack.c.l.b16 %v922_v15  ;;  %v1031_v27 = vsel %vm516_vm6, %v1016_v19, %v1030_v3  ;;  %v2250_v60 = vld [vmem:[#allocation4 + $0x94] ss:$12 sps:$4 sm:$0xff]   ;;  %v2253_v56 = vld [vmem:[#allocation4 + $0x7c] ss:$12 sps:$4 sm:$0xff]   ;;  %v2251_v2 = vld [vmem:[#allocation4 + $0x78] ss:$12 sps:$4 sm:$0xff]  }
 0x4b4   :  { %v1025_v14 = vsel %vm518_vm7, %v1017_v59, %v1024_v43  ;;  %v2271_v4 = vld [vmem:[#allocation4 + $0x80] ss:$12 sps:$4 sm:$0xff]   ;;  %v2256_v58 = vld [vmem:[#allocation4 + $0x64] ss:$12 sps:$4 sm:$0xff]   ;;  %v2272_v45 = vld [vmem:[#allocation4 + $0x68] ss:$12 sps:$4 sm:$0xff]  }
 0x4b5   :  { %v1032_v42 = vsel %vm518_vm7, %v1018_v24, %v1031_v27  ;;  %v1033_v37 = vpack.c.b16 %v1025_v14, %v1025_v14  ;;  %v2254_v11 = vld [vmem:[#allocation4 + $0x60] ss:$12 sps:$4 sm:$0xff]   ;;  %v2273_v61 = vld [vmem:[#allocation4 + $0x50] ss:$12 sps:$4 sm:$0xff]   ;;  %v2274_v22 = vld [vmem:[#allocation4 + $0x38] ss:$12 sps:$4 sm:$0xff]  }
 0x4b6   :  { %v1034_v28 = vpack.c.b16 %v1032_v42, %v1032_v42  ;;  %v2259_v63 = vld [vmem:[#allocation4 + $0x4c] ss:$12 sps:$4 sm:$0xff]   ;;  %v2262_v10 = vld [vmem:[#allocation4 + $0x34] ss:$12 sps:$4 sm:$0xff]   ;;  %v2260_v17 = vld [vmem:[#allocation4 + $0x30] ss:$12 sps:$4 sm:$0xff]  }
 0x4b7   :  { %v2265_v46 = vld [vmem:[#allocation4 + $0x1c] ss:$12 sps:$4 sm:$0xff]   ;;  %v2263_v23 = vld [vmem:[#allocation4 + $0x18] ss:$12 sps:$4 sm:$0xff]   ;;  %v2275_v19 = vld [vmem:[#allocation4 + $0x20] ss:$12 sps:$4 sm:$0xff]  }
 0x4b8   :  { %1325 = vmatprep.mubr.bf16.mxu1 %v1034_v28  ;;  %1366 = vmatprep.mubr.bf16.mxu0 %v1034_v28  ;;  %v2268_v6 = vld [vmem:[#allocation4 + $0x4] ss:$12 sps:$4 sm:$0xff]   ;;  %v2266_v59 = vld [vmem:[#allocation4] ss:$12 sps:$4 sm:$0xff]   ;;  %v2276_v15 = vld [vmem:[#allocation4 + $0x8] ss:$12 sps:$4 sm:$0xff]  }
 0x4b9   :  { %1326 = vmatmul.mubr.bf16.vlgmr.msra.gmra.mxu1 %v1033_v37  ;;  %1367 = vmatmul.mubr.bf16.vlgmr.msra.gmra.mxu0 %v1033_v37 }
 0x4ba   :  { %1503 = vmatpush1.bf16.msra.mxu0 %v2213_v29  ;;  %2092 = vmatpush3.bf16.msra.mxu1 %v2216_v18 }
 0x4bb   :  { %1504 = vmatprep.subr.bf16.mxu0 %v2219_v30  ;;  %2093 = vmatprep.subr.bf16.mxu1 %v2384_v0 }
 0x4bc   :  { %1534 = vmatprep.mubr.bf16.mxu0 %v2387_v40  ;;  %2107 = vmatprep.mubr.msk.bf16.mxu1 %vm2385_vm0, %v2384_v0 }
 0x4be   :  { %1505 = vmatpush1.bf16.msra.mxu0 %v2217_v31  ;;  %2094 = vmatpush3.bf16.msra.mxu1 %v2220_v32 }
 0x4bf   :  { %1506 = vmatprep.subr.bf16.mxu0 %v2223_v20  ;;  %2095 = vmatprep.subr.bf16.mxu1 %v2384_v0 }
 0x4c2   :  { %1507 = vmatpush1.bf16.msra.mxu0 %v2221_v33  ;;  %2096 = vmatpush3.bf16.msra.mxu1 %v2224_v26  ;;  %v1635_v26 = vld [vmem:[%s2953_s12] sm:$0x7] }
 0x4c3   :  { %1508 = vmatprep.subr.bf16.mxu0 %v2227_v34  ;;  %2097 = vmatprep.subr.bf16.mxu1 %v2384_v0 }
 0x4c6   :  { %1509 = vmatpush1.bf16.msra.mxu0 %v2225_v35  ;;  %2098 = vmatpush3.bf16.msra.mxu1 %v2228_v12  ;;  %v1640_v12 = vrot.slane %v1635_v26, %v2489_v7 }
 0x4c7   :  { %1510 = vmatprep.subr.bf16.mxu0 %v2231_v38  ;;  %2099 = vmatprep.subr.bf16.mxu1 %v2384_v0 }
 0x4ca   :  { %1511 = vmatpush1.bf16.msra.mxu0 %v2229_v39  ;;  %2100 = vmatpush3.bf16.msra.mxu1 %v2232_v41 }
 0x4cb   :  { %1512 = vmatprep.subr.bf16.mxu0 %v2235_v1  ;;  %2101 = vmatprep.subr.bf16.mxu1 %v2384_v0 }
 0x4ce   :  { %1513 = vmatpush1.bf16.msra.mxu0 %v2233_v44  ;;  %2102 = vmatpush3.bf16.msra.mxu1 %v2236_v21  ;;  %v1644_v44 = vrot.slane %v1635_v26, %v2483_v5 }
 0x4cf   :  { %1514 = vmatprep.subr.bf16.mxu0 %v2239_v47  ;;  %2103 = vmatprep.subr.bf16.mxu1 %v2384_v0 }
 0x4d2   :  { %1515 = vmatpush1.bf16.msra.mxu0 %v2237_v48  ;;  %2104 = vmatpush3.bf16.msra.mxu1 %v2240_v49 }
 0x4d3   :  { %1516 = vmatprep.subr.bf16.mxu0 %v2243_v50  ;;  %2105 = vmatprep.subr.bf16.mxu1 %v2384_v0 }
 0x4d6   :  { %1517 = vmatpush1.bf16.msra.mxu0 %v2241_v16  ;;  %2106 = vmatpush3.bf16.msra.mxu1 %v2244_v51 }
 0x4d7   :  { %1780 = vmatprep.subr.bf16.mxu0 %v2247_v54  ;;  %2111 = vmatprep.subr.bf16.mxu1 %v2384_v0 }
 0x4d9   :  { %1535 = vmatmul.mubr.bf16.vlgmr.msra.gmra.mxu0 %v874_v55  ;;  %2108 = vmatmul.mubr.bf16.vlgmr.msra.gmra.mxu1 %v874_v55 }
 0x4da   :  { %1781 = vmatpush1.bf16.msra.mxu0 %v2245_v57  ;;  %2112 = vmatpush3.bf16.msra.mxu1 %v2269_v9 }
 0x4db   :  { %1782 = vmatprep.subr.bf16.mxu0 %v2250_v60  ;;  %1812 = vmatprep.mubr.bf16.mxu0 %v2387_v40  ;;  %v2257_v40 = vld [vmem:[#allocation4 + $0x48] ss:$12 sps:$4 sm:$0xff]  }
 0x4dc   :  { %2113 = vmatprep.subr.bf16.mxu1 %v2384_v0  ;;  %2127 = vmatprep.mubr.msk.bf16.mxu1 %vm2385_vm0, %v2384_v0 }
 0x4de   :  { %1783 = vmatpush1.bf16.msra.mxu0 %v2248_v62  ;;  %2114 = vmatpush3.bf16.msra.mxu1 %v2270_v53 }
 0x4df   :  { %1784 = vmatprep.subr.bf16.mxu0 %v2253_v56  ;;  %2115 = vmatprep.subr.bf16.mxu1 %v2384_v0  ;;  %v1648_v56 = vrot.slane %v1635_v26, %v2493_v8 }
 0x4e2   :  { %1785 = vmatpush1.bf16.msra.mxu0 %v2251_v2  ;;  %2116 = vmatpush3.bf16.msra.mxu1 %v2271_v4 }
 0x4e3   :  { %1786 = vmatprep.subr.bf16.mxu0 %v2256_v58  ;;  %2117 = vmatprep.subr.bf16.mxu1 %v2384_v0 }
 0x4e6   :  { %1787 = vmatpush1.bf16.msra.mxu0 %v2254_v11  ;;  %2118 = vmatpush3.bf16.msra.mxu1 %v2272_v45 }
 0x4e7   :  { %1788 = vmatprep.subr.bf16.mxu0 %v2259_v63  ;;  %2119 = vmatprep.subr.bf16.mxu1 %v2384_v0 }
 0x4ea   :  { %1789 = vmatpush1.bf16.msra.mxu0 %v2257_v40  ;;  %2120 = vmatpush3.bf16.msra.mxu1 %v2273_v61 }
 0x4eb   :  { %1790 = vmatprep.subr.bf16.mxu0 %v2262_v10  ;;  %2121 = vmatprep.subr.bf16.mxu1 %v2384_v0 }
 0x4ee   :  { %1791 = vmatpush1.bf16.msra.mxu0 %v2260_v17  ;;  %2122 = vmatpush3.bf16.msra.mxu1 %v2274_v22  ;;  %v2335_v22 = vld [vmem:[%s2942_s1] sm:$0xff] }
 0x4ef   :  { %1792 = vmatprep.subr.bf16.mxu0 %v2265_v46  ;;  %2123 = vmatprep.subr.bf16.mxu1 %v2384_v0 }
 0x4f2   :  { %1793 = vmatpush1.bf16.msra.mxu0 %v2263_v23  ;;  %2124 = vmatpush3.bf16.msra.mxu1 %v2275_v19 }
 0x4f3   :  { %1794 = vmatprep.subr.bf16.mxu0 %v2268_v6  ;;  %2125 = vmatprep.subr.bf16.mxu1 %v2384_v0 }
 0x4f6   :  { %1795 = vmatpush1.bf16.msra.mxu0 %v2266_v59  ;;  %2126 = vmatpush3.bf16.msra.mxu1 %v2276_v15 }
 0x4f9   :  { %1813 = vmatmul.mubr.bf16.vlgmr.msra.gmra.mxu0 %v2544_v25  ;;  %2128 = vmatmul.mubr.bf16.vlgmr.msra.gmra.mxu1 %v2544_v25  ;;  %v1583_v25 = vld [vmem:[%s2951_s10] sm:$0x7] }
 0x4fa   :  { %v1588_v35 = vrot.slane %v1583_v25, %v2489_v7  ;;  %v1592_v49 = vrot.slane %v1583_v25, %v2483_v5  ;;  %v1596_v5 = vrot.slane %v1583_v25, %v2493_v8 }
 0x579   :  { %v1327_v13 = vpop.f32.mrf.mxu1  ;;  %v2047_v36 = vpop.f32.mrf.mxu0 }
 0x57b   :  { %v1329_v43 = vpop.f32.mrf.mxu1  ;;  %v2048_v24 = vpop.f32.mrf.mxu0 }
 0x57c   :  { %v2049_v3 = vadd.f32 %v2048_v24, %v2047_v36 }
 0x57d   :  { %v1331_v14 = vpop.f32.mrf.mxu1  ;;  %v2050_v27 = vpop.f32.mrf.mxu0 }
 0x57f   :  { %v1332_v42 = vpop.f32.mrf.mxu1  ;;  %v2051_v37 = vpop.f32.mrf.mxu0 }
 0x599   :  { %v1536_v28 = vpop.f32.mrf.mxu0  ;;  %v1577_v29 = vpop.f32.mrf.mxu1 }
 0x59a   :  { %v1578_v18 = vadd.f32 %v2049_v3, %v1577_v29  ;;  %v1537_v34 = vadd.f32 %v1536_v28, %v1327_v13 }
 0x59b   :  { %v1538_v30 = vpop.f32.mrf.mxu0  ;;  %v2109_v0 = vpop.f32.mrf.mxu1 }
 0x59c   :  { %v1600_v41 = vadd.f32 %v1588_v35, %v1537_v34  ;;  %v1539_v48 = vadd.f32 %v1538_v30, %v1329_v43  ;;  %v1602_v45 = vadd.f32 %v1596_v5, %v1578_v18 }
 0x59d   :  { %v1540_v31 = vpop.f32.mrf.mxu0  ;;  %v1580_v32 = vpop.f32.mrf.mxu1 }
 0x59e   :  { %v1601_v9 = vadd.f32 %v1592_v49, %v1539_v48 }
 0x59f   :  { %v1541_v20 = vpop.f32.mrf.mxu0  ;;  %v2110_v33 = vpop.f32.mrf.mxu1 }
 0x5b9   :  { %v1814_v38 = vpop.f32.mrf.mxu0  ;;  %v1855_v39 = vpop.f32.mrf.mxu1 }
 0x5ba   :  { %v1815_v1 = vadd.f32 %v1814_v38, %v1640_v12  ;;  %v1856_v58 = vadd.f32 %v1855_v39, %v1648_v56 }
 0x5bb   :  { %v1816_v21 = vpop.f32.mrf.mxu0  ;;  %v2129_v47 = vpop.f32.mrf.mxu1 }
 0x5bc   :  { %v1861_v50 = vadd.f32 %v1815_v1, %v1600_v41  ;;  %v1817_v54 = vadd.f32 %v1816_v21, %v1644_v44 }
 0x5bd   :  { %v1818_v16 = vpop.f32.mrf.mxu0  ;;  %v1858_v51 = vpop.f32.mrf.mxu1 }
 0x5be   :  { %v2001_v52 = vmul.f32 -1.442695, %v1861_v50  ;;  %v1868_v7 = vadd.f32 %v1817_v54, %v1601_v9 }
 0x5bf   :  { %v1819_v55 = vpop.f32.mrf.mxu0  ;;  %v2130_v57 = vpop.f32.mrf.mxu1 }
 0x5c0   :  { %2325 = vpow2.f32 %v2001_v52  ;;  %v2002_v60 = vmul.f32 -1.442695, %v1868_v7 }
 0x5c2   :  { %2327 = vpow2.f32 %v2002_v60 }
 0x5cd   :  { %v2326_v62 = vpop.eup %2325 }
 0x5ce   :  { %v1865_v53 = vadd.f32 1.0, %v2326_v62 }
 0x5cf   :  { %v2328_v2 = vpop.eup %2327 }
 0x5d0   :  { %2329 = vrcp.f32 %v1865_v53  ;;  %v1872_v4 = vadd.f32 1.0, %v2328_v2 }
 0x5d2   :  { %2331 = vrcp.f32 %v1872_v4 }
 0x5dd   :  { %v2330_v11 = vpop.eup %2329 }
 0x5de   :  { %v1875_v63 = vmul.f32 %v2330_v11, %v1856_v58 }
 0x5df   :  { %v2332_v61 = vpop.eup %2331 }
 0x5e0   :  { %v1876_v40 = vadd.f32 %v1875_v63, %v1602_v45  ;;  %v1878_v10 = vsub.f32 1.0, %v2332_v61  ;;  %v1880_v46 = vmul.f32 %v2335_v22, %v2332_v61 }
 0x5e2   :  { %2333 = vtanh.f32 %v1876_v40 }
 0x5ef   :  { %v2334_v17 = vpop.eup %2333 }
 0x5f0   :  { %v1879_v23 = vmul.f32 %v2334_v17, %v1878_v10 }
 0x5f2   :  { %v1881_v19 = vadd.f32 %v1880_v46, %v1879_v23 }
 0x5f4   :  { %1882 = vst [vmem:[%s2954_s13] sm:$0xff] %v1881_v19  ;;  %v1883_v8 = vpack.c.bf16 %v1881_v19, %v1881_v19 }
 0x5f6   :  { %1884 = vst [vmem:[%s2955_s14] sm:$0xf] %v1883_v8 }
 0x5f7   :  { %1893 = vsyncpa [#allocation3], 1 }
 0x5f8   :  { %1894 = vsyncpa [#allocation5], 1 }

</bundles_post_ra>
